<compile_context>
chip_gen: v6e
topology: v6e:2x2x1
jax: 0.10.0
libtpu: 0.0.40
codegen_flags: <defaults>
</compile_context>

<pallas_src>
import functools
import math

import jax
import jax.numpy as jnp
from jax.experimental import pallas as pl
from jax.experimental.pallas import tpu as pltpu


def _gelu_tanh(x):
    # Matches the module's GELU: 0.5*x*(1 + tanh(sqrt(2/pi)*(x + 0.044715*x^3)))
    c = math.sqrt(2.0 / math.pi)
    return 0.5 * x * (1.0 + jnp.tanh(c * (x + 0.044715 * (x * x * x))))


def _round_up(n, m):
    return ((n + m - 1) // m) * m


def _choose_tm(n_tok, tm_max):
    """Token-tile size: big (amortize ~0.35us/step), >=2 grid steps for v7x's
    two TensorCores, and bounded last-tile padding waste."""
    n8 = _round_up(max(n_tok, 1), 8)
    if n8 <= 16:
        return n8
    # At least two grid steps so dimension_semantics=("parallel",) can split
    # the token grid across both v7x TensorCores (no-op on v5e/v6e).
    tm = min(_round_up(tm_max, 8), _round_up((n8 + 1) // 2, 8))
    # Shrink while zero-row padding of the final tile would exceed ~12.5%.
    while tm > 64:
        n_pad = _round_up(n8, tm)
        if (n_pad - n8) * 8 <= n_pad:
            break
        tm = _round_up(max(tm // 2, 8), 8)
    return max(tm, 8)


def _vmem_limit_bytes():
    """Generation-aware VMEM budget: ~75% of physical capacity
    (v5e/v6e: 128 MiB -> 96 MiB, v7x: 64 MiB -> 48 MiB)."""
    try:
        cap = int(pltpu.get_tpu_info().vmem_capacity_bytes)
    except Exception:
        cap = 64 * 1024 * 1024  # conservative (v7x-sized) fallback
    return max(32 * 1024 * 1024, min(cap * 3 // 4, 100 * 1024 * 1024))


def _moe_kernel(x_ref, gw_ref, w1g_ref, b1_ref, w2_ref, b2_ref, g_ref, bt_ref,
                o_ref, *, num_experts_per_tok):
    num_experts, hidden, d_model = w2_ref.shape
    x_f32 = x_ref[...].astype(jnp.float32)            # (tm, D) f32 for residual/LN
    tm = x_f32.shape[0]
    x_bf = x_f32.astype(jnp.bfloat16)                 # bf16 copy feeding the MXU

    # ---- gate: scores (f32 for exact top-k parity), top-k, masked softmax ----
    scores = jnp.dot(x_f32, gw_ref[...].astype(jnp.float32),
                     preferred_element_type=jnp.float32)          # (tm, E)
    neg = jnp.float32(-1e30)
    col = jax.lax.broadcasted_iota(jnp.int32, scores.shape, 1)
    big = jnp.int32(num_experts)

    masked = scores
    sel = jnp.zeros(scores.shape, dtype=jnp.bool_)
    for _ in range(num_experts_per_tok):               # k is small & static
        m = jnp.max(masked, axis=-1, keepdims=True)
        is_max = masked == m
        # first (lowest-index) occurrence of the max -> matches torch.topk ties
        amax = jnp.min(jnp.where(is_max, col, big), axis=-1, keepdims=True)
        pick = col == amax
        sel = sel | pick
        masked = jnp.where(pick, neg, masked)

    sel_scores = jnp.where(sel, scores, neg)
    smax = jnp.max(sel_scores, axis=-1, keepdims=True)
    p = jnp.where(sel, jnp.exp(sel_scores - smax), 0.0)
    combine = p / jnp.sum(p, axis=-1, keepdims=True)    # (tm, E), 0 if unselected

    # Hoist the per-expert combine-weight broadcasts out of the expert loop.
    cw = [jnp.broadcast_to(combine[:, e:e + 1], (tm, d_model))
          for e in range(num_experts)]

    # ---- fused first-layer GEMM over ALL experts (bf16 in, f32 accumulate) ----
    h_all = jnp.dot(x_bf, w1g_ref[...],
                    preferred_element_type=jnp.float32)            # (tm, E*2D)
    h_all = _gelu_tanh(h_all + b1_ref[...])                        # GELU whole slab

    # ---- per-expert second matmul + residual + LayerNorm + weighted combine ----
    # TODO(synk): for larger num_experts switch to routed compute via
    # PrefetchScalarGridSpec (scalar-prefetched token offsets) instead of the
    # dense combine; at E=4, k=2 dense is only 2x the routed FLOPs.
    acc = jnp.zeros((tm, d_model), dtype=jnp.float32)
    for e in range(num_experts):                        # static unrolled (E=4)
        h_e = h_all[:, e * hidden:(e + 1) * hidden].astype(jnp.bfloat16)
        o_e = jnp.dot(h_e, w2_ref[e],
                      preferred_element_type=jnp.float32) + b2_ref[e].astype(jnp.float32)
        # TODO(synk): nn.Dropout(0.1) would apply here in training; inference no-op.
        z = x_f32 + o_e                                 # residual
        mu = jnp.mean(z, axis=-1, keepdims=True)
        zc = z - mu
        var = jnp.mean(zc * zc, axis=-1, keepdims=True)
        zn = zc * jax.lax.rsqrt(var + jnp.float32(1e-6))
        zn = zn * g_ref[e].astype(jnp.float32) + bt_ref[e].astype(jnp.float32)
        acc = acc + cw[e] * zn

    o_ref[...] = acc.astype(o_ref.dtype)


def moe_forward(x, params, num_experts_per_tok, *, tm=512):
    """x: (..., d_model).  params: gate_w (D,E); w1 (E,D,2D); b1 (E,2D);
    w2 (E,2D,D); b2 (E,D); ln_g (E,D); ln_b (E,D)."""
    orig_shape = x.shape
    d_model = x.shape[-1]
    xt = x.reshape(-1, d_model)
    n_tok = xt.shape[0]
    num_experts, _, hidden = params["w1"].shape

    # Lane-dense layout assumption (BlockSpecs + 128-lane LayerNorm reductions).
    assert d_model % 128 == 0 and hidden % 128 == 0, (
        "moe_forward kernel assumes d_model and hidden are multiples of 128")

    tm = _choose_tm(n_tok, tm)
    n_pad = _round_up(n_tok, tm)
    if n_pad != n_tok:
        xt = jnp.pad(xt, ((0, n_pad - n_tok), (0, 0)))

    # Pre-pack weights:
    #  * all experts' Lin1 weights fused column-wise -> one wide lane-dense GEMM
    #  * MXU operands (w1, w2) cast to bf16 (f32 accumulation in-kernel);
    #    gate / biases / LN params stay f32.
    w1g = jnp.transpose(params["w1"], (1, 0, 2)).reshape(
        d_model, num_experts * hidden).astype(jnp.bfloat16)
    b1_all = params["b1"].reshape(1, num_experts * hidden).astype(jnp.float32)
    w2 = params["w2"].astype(jnp.bfloat16)
    gate_w = params["gate_w"].astype(jnp.float32)

    args = (
        xt,
        gate_w,
        w1g,
        b1_all,
        w2,
        params["b2"].reshape(num_experts, 1, d_model).astype(jnp.float32),
        params["ln_g"].reshape(num_experts, 1, d_model).astype(jnp.float32),
        params["ln_b"].reshape(num_experts, 1, d_model).astype(jnp.float32),
    )

    kernel = functools.partial(_moe_kernel,
                               num_experts_per_tok=num_experts_per_tok)

    # Weight/bias specs use constant index_maps so they are DMA'd once and stay
    # VMEM-resident.  At these sizes (<1 MiB bf16 total) the default
    # double-buffering overhead is negligible; switch those specs to
    # pipeline_mode=pl.Buffered(1) once d_model/E grow toward v7x's 64 MiB VMEM.
    out = pl.pallas_call(
        kernel,
        out_shape=jax.ShapeDtypeStruct((n_pad, d_model), x.dtype),
        grid_spec=pl.GridSpec(
            grid=(n_pad // tm,),
            in_specs=[
                pl.BlockSpec((tm, d_model), lambda i: (i, 0)),            # x tile
                pl.BlockSpec((d_model, num_experts), lambda i: (0, 0)),   # gate
                pl.BlockSpec((d_model, num_experts * hidden), lambda i: (0, 0)),
                pl.BlockSpec((1, num_experts * hidden), lambda i: (0, 0)),
                pl.BlockSpec((num_experts, hidden, d_model), lambda i: (0, 0, 0)),
                pl.BlockSpec((num_experts, 1, d_model), lambda i: (0, 0, 0)),
                pl.BlockSpec((num_experts, 1, d_model), lambda i: (0, 0, 0)),
                pl.BlockSpec((num_experts, 1, d_model), lambda i: (0, 0, 0)),
            ],
            out_specs=pl.BlockSpec((tm, d_model), lambda i: (i, 0)),
        ),
        compiler_params=pltpu.CompilerParams(
            dimension_semantics=("parallel",),       # splits token grid on v7x 2-TC
            vmem_limit_bytes=_vmem_limit_bytes(),    # generation-aware budget
        ),
    )(*args)

    return out[:n_tok].reshape(orig_shape)


def init_moe_params(key, d_model, num_experts, dtype=jnp.float32):
    """Mirror nn.Linear / nn.LayerNorm defaults (uniform +/- 1/sqrt(fan_in))."""
    hidden = 2 * d_model
    keys = jax.random.split(key, 1 + 4 * num_experts)
    gb = 1.0 / math.sqrt(d_model)
    params = {"gate_w": jax.random.uniform(keys[0], (d_model, num_experts),
                                           dtype, -gb, gb)}
    w1, b1, w2, b2, g, bt = [], [], [], [], [], []
    for e in range(num_experts):
        k1, k2, k3, k4 = keys[1 + 4 * e: 5 + 4 * e]
        b_in = 1.0 / math.sqrt(d_model)
        b_h = 1.0 / math.sqrt(hidden)
        w1.append(jax.random.uniform(k1, (d_model, hidden), dtype, -b_in, b_in))
        b1.append(jax.random.uniform(k2, (hidden,), dtype, -b_in, b_in))
        w2.append(jax.random.uniform(k3, (hidden, d_model), dtype, -b_h, b_h))
        b2.append(jax.random.uniform(k4, (d_model,), dtype, -b_h, b_h))
        g.append(jnp.ones((d_model,), dtype))
        bt.append(jnp.zeros((d_model,), dtype))
    params.update(w1=jnp.stack(w1), b1=jnp.stack(b1),
                  w2=jnp.stack(w2), b2=jnp.stack(b2),
                  ln_g=jnp.stack(g), ln_b=jnp.stack(bt))
    return params


def moe_ref(x, params, num_experts_per_tok):
    """Pure-JAX reference mirroring the PyTorch MoE forward (top-k routing)."""
    orig_shape = x.shape
    d_model = x.shape[-1]
    xt = x.reshape(-1, d_model)
    scores = xt @ params["gate_w"]
    topv, topi = jax.lax.top_k(scores, num_experts_per_tok)
    w = jax.nn.softmax(topv, axis=-1)
    num_experts = params["w1"].shape[0]
    outs = []
    for e in range(num_experts):
        h = _gelu_tanh(xt @ params["w1"][e] + params["b1"][e])
        o = h @ params["w2"][e] + params["b2"][e]
        z = xt + o
        mu = z.mean(-1, keepdims=True)
        var = ((z - mu) ** 2).mean(-1, keepdims=True)
        zn = (z - mu) / jnp.sqrt(var + 1e-6)
        outs.append(zn * params["ln_g"][e] + params["ln_b"][e])
    all_out = jnp.stack(outs, axis=1)                              # (T, E, D)
    sel = jnp.take_along_axis(all_out, topi[..., None], axis=1)    # (T, k, D)
    y = (sel * w[..., None]).sum(axis=1)
    return y.reshape(orig_shape)


if __name__ == "__main__":
    key = jax.random.PRNGKey(0)
    k_x, k_p = jax.random.split(key)

    BATCH, SEQ, D_MODEL = 2, 16, 128
    NUM_EXPERTS, TOP_K = 4, 2

    x = jax.random.normal(k_x, (BATCH, SEQ, D_MODEL), dtype=jnp.float32)
    params = init_moe_params(k_p, D_MODEL, NUM_EXPERTS)

    out = moe_forward(x, params, TOP_K)
    out = jax.block_until_ready(out)

    ref = moe_ref(x, params, TOP_K)
    assert out.shape == x.shape
    # tolerance covers bf16 MXU matmuls (f32 accumulation) vs the f32 reference
    assert jnp.allclose(out, ref, atol=3e-2, rtol=3e-2), "mismatch vs reference"

    print("KERNEL_OK")
</pallas_src>

<mosaic_0001>
module attributes {stable_mosaic.version = 11 : i64} {
  func.func @_moe_kernel(%arg0: i32, %arg1: memref<16x128xf32, #tpu.memory_space<vmem>>, %arg2: memref<128x4xf32, #tpu.memory_space<vmem>>, %arg3: memref<128x1024xbf16, #tpu.memory_space<vmem>>, %arg4: memref<1x1024xf32, #tpu.memory_space<vmem>>, %arg5: memref<4x256x128xbf16, #tpu.memory_space<vmem>>, %arg6: memref<4x1x128xf32, #tpu.memory_space<vmem>>, %arg7: memref<4x1x128xf32, #tpu.memory_space<vmem>>, %arg8: memref<4x1x128xf32, #tpu.memory_space<vmem>>, %arg9: memref<16x128xf32, #tpu.memory_space<vmem>>) attributes {dimension_semantics = [#tpu.dimension_semantics<parallel>], iteration_bounds = array<i64: 2>, scalar_prefetch = 0 : i64, scratch_operands = 0 : i64, tpu.core_type = #tpu.core_type<tc>, window_params = [{transform_indices = @transform_0, window_bounds = array<i64: 16, 128>}, {pipeline_mode = #tpu.pipeline_mode<synchronous>, transform_indices = @transform_1, window_bounds = array<i64: 128, 4>}, {pipeline_mode = #tpu.pipeline_mode<synchronous>, transform_indices = @transform_2, window_bounds = array<i64: 128, 1024>}, {pipeline_mode = #tpu.pipeline_mode<synchronous>, transform_indices = @transform_3, window_bounds = array<i64: 1, 1024>}, {pipeline_mode = #tpu.pipeline_mode<synchronous>, transform_indices = @transform_4, window_bounds = array<i64: 4, 256, 128>}, {pipeline_mode = #tpu.pipeline_mode<synchronous>, transform_indices = @transform_5, window_bounds = array<i64: 4, 1, 128>}, {pipeline_mode = #tpu.pipeline_mode<synchronous>, transform_indices = @transform_6, window_bounds = array<i64: 4, 1, 128>}, {pipeline_mode = #tpu.pipeline_mode<synchronous>, transform_indices = @transform_7, window_bounds = array<i64: 4, 1, 128>}, {transform_indices = @transform_8, window_bounds = array<i64: 16, 128>}]} {
    %c0 = arith.constant 0 : index
    %c0_0 = arith.constant 0 : index
    %0 = vector.load %arg1[%c0, %c0_0] : memref<16x128xf32, #tpu.memory_space<vmem>>, vector<16x128xf32>
    %1 = arith.truncf %0 : vector<16x128xf32> to vector<16x128xbf16>
    %c0_1 = arith.constant 0 : index
    %c0_2 = arith.constant 0 : index
    %2 = vector.load %arg2[%c0_1, %c0_2] : memref<128x4xf32, #tpu.memory_space<vmem>>, vector<128x4xf32>
    %cst = arith.constant dense<0.000000e+00> : vector<16x4xf32>
    %3 = tpu.matmul %0, %2, %cst {dimension_numbers = #tpu.dot_dimension_numbers<[1], [0], [0], [1], [0, 0, 1, 1], [], []>} : vector<16x128xf32>, vector<128x4xf32>, vector<16x4xf32> -> vector<16x4xf32>
    %4 = tpu.iota {dimensions = array<i32: 1>} : vector<16x4xi32>
    %false = arith.constant false
    %5 = vector.broadcast %false : i1 to vector<16x4xi1>
    %cst_3 = arith.constant dense<0xFF800000> : vector<16xf32>
    %6 = vector.multi_reduction <maximumf>, %3, %cst_3 [1] : vector<16x4xf32> to vector<16xf32>
    %7 = vector.shape_cast %6 : vector<16xf32> to vector<16x1xf32>
    %8 = vector.broadcast %7 : vector<16x1xf32> to vector<16x4xf32>
    %9 = arith.cmpf oeq, %3, %8 : vector<16x4xf32>
    %c4_i32 = arith.constant 4 : i32
    %10 = vector.broadcast %c4_i32 : i32 to vector<16x4xi32>
    %11 = arith.select %9, %4, %10 : vector<16x4xi1>, vector<16x4xi32>
    %cst_4 = arith.constant dense<2147483647> : vector<16xi32>
    %12 = vector.multi_reduction <minsi>, %11, %cst_4 [1] : vector<16x4xi32> to vector<16xi32>
    %13 = vector.shape_cast %12 : vector<16xi32> to vector<16x1xi32>
    %14 = vector.broadcast %13 : vector<16x1xi32> to vector<16x4xi32>
    %15 = arith.cmpi eq, %4, %14 : vector<16x4xi32>
    %16 = arith.ori %5, %15 : vector<16x4xi1>
    %cst_5 = arith.constant -1.000000e+30 : f32
    %17 = vector.broadcast %cst_5 : f32 to vector<16x4xf32>
    %18 = arith.select %15, %17, %3 : vector<16x4xi1>, vector<16x4xf32>
    %cst_6 = arith.constant dense<0xFF800000> : vector<16xf32>
    %19 = vector.multi_reduction <maximumf>, %18, %cst_6 [1] : vector<16x4xf32> to vector<16xf32>
    %20 = vector.shape_cast %19 : vector<16xf32> to vector<16x1xf32>
    %21 = vector.broadcast %20 : vector<16x1xf32> to vector<16x4xf32>
    %22 = arith.cmpf oeq, %18, %21 : vector<16x4xf32>
    %c4_i32_7 = arith.constant 4 : i32
    %23 = vector.broadcast %c4_i32_7 : i32 to vector<16x4xi32>
    %24 = arith.select %22, %4, %23 : vector<16x4xi1>, vector<16x4xi32>
    %cst_8 = arith.constant dense<2147483647> : vector<16xi32>
    %25 = vector.multi_reduction <minsi>, %24, %cst_8 [1] : vector<16x4xi32> to vector<16xi32>
    %26 = vector.shape_cast %25 : vector<16xi32> to vector<16x1xi32>
    %27 = vector.broadcast %26 : vector<16x1xi32> to vector<16x4xi32>
    %28 = arith.cmpi eq, %4, %27 : vector<16x4xi32>
    %29 = arith.ori %16, %28 : vector<16x4xi1>
    %cst_9 = arith.constant -1.000000e+30 : f32
    %30 = vector.broadcast %cst_9 : f32 to vector<16x4xf32>
    %31 = arith.select %29, %3, %30 : vector<16x4xi1>, vector<16x4xf32>
    %cst_10 = arith.constant dense<0xFF800000> : vector<16xf32>
    %32 = vector.multi_reduction <maximumf>, %31, %cst_10 [1] : vector<16x4xf32> to vector<16xf32>
    %33 = vector.shape_cast %32 : vector<16xf32> to vector<16x1xf32>
    %34 = vector.broadcast %33 : vector<16x1xf32> to vector<16x4xf32>
    %35 = arith.subf %31, %34 : vector<16x4xf32>
    %36 = math.exp %35 : vector<16x4xf32>
    %cst_11 = arith.constant 0.000000e+00 : f32
    %37 = vector.broadcast %cst_11 : f32 to vector<16x4xf32>
    %38 = arith.select %29, %36, %37 : vector<16x4xi1>, vector<16x4xf32>
    %cst_12 = arith.constant dense<0.000000e+00> : vector<16xf32>
    %39 = vector.multi_reduction <add>, %38, %cst_12 [1] : vector<16x4xf32> to vector<16xf32>
    %40 = vector.shape_cast %39 : vector<16xf32> to vector<16x1xf32>
    %41 = vector.broadcast %40 : vector<16x1xf32> to vector<16x4xf32>
    %42 = arith.divf %38, %41 : vector<16x4xf32>
    %43 = vector.extract_strided_slice %42 {offsets = [0, 0], sizes = [16, 1], strides = [1, 1]} : vector<16x4xf32> to vector<16x1xf32>
    %44 = vector.shape_cast %43 : vector<16x1xf32> to vector<16x1xf32>
    %45 = vector.broadcast %44 : vector<16x1xf32> to vector<16x128xf32>
    %46 = vector.extract_strided_slice %42 {offsets = [0, 1], sizes = [16, 1], strides = [1, 1]} : vector<16x4xf32> to vector<16x1xf32>
    %47 = vector.shape_cast %46 : vector<16x1xf32> to vector<16x1xf32>
    %48 = vector.broadcast %47 : vector<16x1xf32> to vector<16x128xf32>
    %49 = vector.extract_strided_slice %42 {offsets = [0, 2], sizes = [16, 1], strides = [1, 1]} : vector<16x4xf32> to vector<16x1xf32>
    %50 = vector.shape_cast %49 : vector<16x1xf32> to vector<16x1xf32>
    %51 = vector.broadcast %50 : vector<16x1xf32> to vector<16x128xf32>
    %52 = vector.extract_strided_slice %42 {offsets = [0, 3], sizes = [16, 1], strides = [1, 1]} : vector<16x4xf32> to vector<16x1xf32>
    %53 = vector.shape_cast %52 : vector<16x1xf32> to vector<16x1xf32>
    %54 = vector.broadcast %53 : vector<16x1xf32> to vector<16x128xf32>
    %c0_13 = arith.constant 0 : index
    %c0_14 = arith.constant 0 : index
    %55 = vector.load %arg3[%c0_13, %c0_14] : memref<128x1024xbf16, #tpu.memory_space<vmem>>, vector<128x1024xbf16>
    %cst_15 = arith.constant dense<0.000000e+00> : vector<16x1024xf32>
    %56 = tpu.matmul %1, %55, %cst_15 {dimension_numbers = #tpu.dot_dimension_numbers<[1], [0], [0], [1], [0, 0, 1, 1], [], []>} : vector<16x128xbf16>, vector<128x1024xbf16>, vector<16x1024xf32> -> vector<16x1024xf32>
    %c0_16 = arith.constant 0 : index
    %c0_17 = arith.constant 0 : index
    %57 = vector.load %arg4[%c0_16, %c0_17] : memref<1x1024xf32, #tpu.memory_space<vmem>>, vector<1x1024xf32>
    %58 = vector.broadcast %57 : vector<1x1024xf32> to vector<16x1024xf32>
    %59 = arith.addf %56, %58 : vector<16x1024xf32>
    %cst_18 = arith.constant 5.000000e-01 : f32
    %60 = vector.broadcast %cst_18 : f32 to vector<16x1024xf32>
    %61 = arith.mulf %60, %59 : vector<16x1024xf32>
    %62 = arith.mulf %59, %59 : vector<16x1024xf32>
    %63 = arith.mulf %62, %59 : vector<16x1024xf32>
    %cst_19 = arith.constant 4.471500e-02 : f32
    %64 = vector.broadcast %cst_19 : f32 to vector<16x1024xf32>
    %65 = arith.mulf %64, %63 : vector<16x1024xf32>
    %66 = arith.addf %59, %65 : vector<16x1024xf32>
    %cst_20 = arith.constant 0.797884583 : f32
    %67 = vector.broadcast %cst_20 : f32 to vector<16x1024xf32>
    %68 = arith.mulf %67, %66 : vector<16x1024xf32>
    %69 = math.tanh %68 : vector<16x1024xf32>
    %cst_21 = arith.constant 1.000000e+00 : f32
    %70 = vector.broadcast %cst_21 : f32 to vector<16x1024xf32>
    %71 = arith.addf %70, %69 : vector<16x1024xf32>
    %72 = arith.mulf %61, %71 : vector<16x1024xf32>
    %cst_22 = arith.constant 0.000000e+00 : f32
    %73 = vector.broadcast %cst_22 : f32 to vector<16x128xf32>
    %74 = vector.extract_strided_slice %72 {offsets = [0, 0], sizes = [16, 256], strides = [1, 1]} : vector<16x1024xf32> to vector<16x256xf32>
    %75 = arith.truncf %74 : vector<16x256xf32> to vector<16x256xbf16>
    %c0_23 = arith.constant 0 : index
    %c0_24 = arith.constant 0 : index
    %c0_25 = arith.constant 0 : index
    %76 = vector.load %arg5[%c0_23, %c0_24, %c0_25] : memref<4x256x128xbf16, #tpu.memory_space<vmem>>, vector<1x256x128xbf16>
    %77 = vector.shape_cast %76 : vector<1x256x128xbf16> to vector<256x128xbf16>
    %cst_26 = arith.constant dense<0.000000e+00> : vector<16x128xf32>
    %78 = tpu.matmul %75, %77, %cst_26 {dimension_numbers = #tpu.dot_dimension_numbers<[1], [0], [0], [1], [0, 0, 1, 1], [], []>} : vector<16x256xbf16>, vector<256x128xbf16>, vector<16x128xf32> -> vector<16x128xf32>
    %c0_27 = arith.constant 0 : index
    %c0_28 = arith.constant 0 : index
    %c0_29 = arith.constant 0 : index
    %79 = vector.load %arg6[%c0_27, %c0_28, %c0_29] : memref<4x1x128xf32, #tpu.memory_space<vmem>>, vector<1x1x128xf32>
    %80 = vector.shape_cast %79 : vector<1x1x128xf32> to vector<1x128xf32>
    %81 = vector.broadcast %80 : vector<1x128xf32> to vector<16x128xf32>
    %82 = arith.addf %78, %81 : vector<16x128xf32>
    %83 = arith.addf %0, %82 : vector<16x128xf32>
    %cst_30 = arith.constant dense<0.000000e+00> : vector<16xf32>
    %84 = vector.multi_reduction <add>, %83, %cst_30 [1] : vector<16x128xf32> to vector<16xf32>
    %85 = vector.shape_cast %84 : vector<16xf32> to vector<16x1xf32>
    %cst_31 = arith.constant 1.280000e+02 : f32
    %86 = vector.broadcast %cst_31 : f32 to vector<16x1xf32>
    %87 = arith.divf %85, %86 : vector<16x1xf32>
    %88 = vector.broadcast %87 : vector<16x1xf32> to vector<16x128xf32>
    %89 = arith.subf %83, %88 : vector<16x128xf32>
    %90 = arith.mulf %89, %89 : vector<16x128xf32>
    %cst_32 = arith.constant dense<0.000000e+00> : vector<16xf32>
    %91 = vector.multi_reduction <add>, %90, %cst_32 [1] : vector<16x128xf32> to vector<16xf32>
    %92 = vector.shape_cast %91 : vector<16xf32> to vector<16x1xf32>
    %cst_33 = arith.constant 1.280000e+02 : f32
    %93 = vector.broadcast %cst_33 : f32 to vector<16x1xf32>
    %94 = arith.divf %92, %93 : vector<16x1xf32>
    %cst_34 = arith.constant 9.99999997E-7 : f32
    %95 = vector.broadcast %cst_34 : f32 to vector<16x1xf32>
    %96 = arith.addf %94, %95 : vector<16x1xf32>
    %97 = math.rsqrt %96 : vector<16x1xf32>
    %98 = vector.broadcast %97 : vector<16x1xf32> to vector<16x128xf32>
    %99 = arith.mulf %89, %98 : vector<16x128xf32>
    %c0_35 = arith.constant 0 : index
    %c0_36 = arith.constant 0 : index
    %c0_37 = arith.constant 0 : index
    %100 = vector.load %arg7[%c0_35, %c0_36, %c0_37] : memref<4x1x128xf32, #tpu.memory_space<vmem>>, vector<1x1x128xf32>
    %101 = vector.shape_cast %100 : vector<1x1x128xf32> to vector<1x128xf32>
    %102 = vector.broadcast %101 : vector<1x128xf32> to vector<16x128xf32>
    %103 = arith.mulf %99, %102 : vector<16x128xf32>
    %c0_38 = arith.constant 0 : index
    %c0_39 = arith.constant 0 : index
    %c0_40 = arith.constant 0 : index
    %104 = vector.load %arg8[%c0_38, %c0_39, %c0_40] : memref<4x1x128xf32, #tpu.memory_space<vmem>>, vector<1x1x128xf32>
    %105 = vector.shape_cast %104 : vector<1x1x128xf32> to vector<1x128xf32>
    %106 = vector.broadcast %105 : vector<1x128xf32> to vector<16x128xf32>
    %107 = arith.addf %103, %106 : vector<16x128xf32>
    %108 = arith.mulf %45, %107 : vector<16x128xf32>
    %109 = arith.addf %73, %108 : vector<16x128xf32>
    %110 = vector.extract_strided_slice %72 {offsets = [0, 256], sizes = [16, 256], strides = [1, 1]} : vector<16x1024xf32> to vector<16x256xf32>
    %111 = arith.truncf %110 : vector<16x256xf32> to vector<16x256xbf16>
    %c1 = arith.constant 1 : index
    %c0_41 = arith.constant 0 : index
    %c0_42 = arith.constant 0 : index
    %112 = vector.load %arg5[%c1, %c0_41, %c0_42] : memref<4x256x128xbf16, #tpu.memory_space<vmem>>, vector<1x256x128xbf16>
    %113 = vector.shape_cast %112 : vector<1x256x128xbf16> to vector<256x128xbf16>
    %cst_43 = arith.constant dense<0.000000e+00> : vector<16x128xf32>
    %114 = tpu.matmul %111, %113, %cst_43 {dimension_numbers = #tpu.dot_dimension_numbers<[1], [0], [0], [1], [0, 0, 1, 1], [], []>} : vector<16x256xbf16>, vector<256x128xbf16>, vector<16x128xf32> -> vector<16x128xf32>
    %c1_44 = arith.constant 1 : index
    %c0_45 = arith.constant 0 : index
    %c0_46 = arith.constant 0 : index
    %115 = vector.load %arg6[%c1_44, %c0_45, %c0_46] : memref<4x1x128xf32, #tpu.memory_space<vmem>>, vector<1x1x128xf32>
    %116 = vector.shape_cast %115 : vector<1x1x128xf32> to vector<1x128xf32>
    %117 = vector.broadcast %116 : vector<1x128xf32> to vector<16x128xf32>
    %118 = arith.addf %114, %117 : vector<16x128xf32>
    %119 = arith.addf %0, %118 : vector<16x128xf32>
    %cst_47 = arith.constant dense<0.000000e+00> : vector<16xf32>
    %120 = vector.multi_reduction <add>, %119, %cst_47 [1] : vector<16x128xf32> to vector<16xf32>
    %121 = vector.shape_cast %120 : vector<16xf32> to vector<16x1xf32>
    %cst_48 = arith.constant 1.280000e+02 : f32
    %122 = vector.broadcast %cst_48 : f32 to vector<16x1xf32>
    %123 = arith.divf %121, %122 : vector<16x1xf32>
    %124 = vector.broadcast %123 : vector<16x1xf32> to vector<16x128xf32>
    %125 = arith.subf %119, %124 : vector<16x128xf32>
    %126 = arith.mulf %125, %125 : vector<16x128xf32>
    %cst_49 = arith.constant dense<0.000000e+00> : vector<16xf32>
    %127 = vector.multi_reduction <add>, %126, %cst_49 [1] : vector<16x128xf32> to vector<16xf32>
    %128 = vector.shape_cast %127 : vector<16xf32> to vector<16x1xf32>
    %cst_50 = arith.constant 1.280000e+02 : f32
    %129 = vector.broadcast %cst_50 : f32 to vector<16x1xf32>
    %130 = arith.divf %128, %129 : vector<16x1xf32>
    %cst_51 = arith.constant 9.99999997E-7 : f32
    %131 = vector.broadcast %cst_51 : f32 to vector<16x1xf32>
    %132 = arith.addf %130, %131 : vector<16x1xf32>
    %133 = math.rsqrt %132 : vector<16x1xf32>
    %134 = vector.broadcast %133 : vector<16x1xf32> to vector<16x128xf32>
    %135 = arith.mulf %125, %134 : vector<16x128xf32>
    %c1_52 = arith.constant 1 : index
    %c0_53 = arith.constant 0 : index
    %c0_54 = arith.constant 0 : index
    %136 = vector.load %arg7[%c1_52, %c0_53, %c0_54] : memref<4x1x128xf32, #tpu.memory_space<vmem>>, vector<1x1x128xf32>
    %137 = vector.shape_cast %136 : vector<1x1x128xf32> to vector<1x128xf32>
    %138 = vector.broadcast %137 : vector<1x128xf32> to vector<16x128xf32>
    %139 = arith.mulf %135, %138 : vector<16x128xf32>
    %c1_55 = arith.constant 1 : index
    %c0_56 = arith.constant 0 : index
    %c0_57 = arith.constant 0 : index
    %140 = vector.load %arg8[%c1_55, %c0_56, %c0_57] : memref<4x1x128xf32, #tpu.memory_space<vmem>>, vector<1x1x128xf32>
    %141 = vector.shape_cast %140 : vector<1x1x128xf32> to vector<1x128xf32>
    %142 = vector.broadcast %141 : vector<1x128xf32> to vector<16x128xf32>
    %143 = arith.addf %139, %142 : vector<16x128xf32>
    %144 = arith.mulf %48, %143 : vector<16x128xf32>
    %145 = arith.addf %109, %144 : vector<16x128xf32>
    %146 = vector.extract_strided_slice %72 {offsets = [0, 512], sizes = [16, 256], strides = [1, 1]} : vector<16x1024xf32> to vector<16x256xf32>
    %147 = arith.truncf %146 : vector<16x256xf32> to vector<16x256xbf16>
    %c2 = arith.constant 2 : index
    %c0_58 = arith.constant 0 : index
    %c0_59 = arith.constant 0 : index
    %148 = vector.load %arg5[%c2, %c0_58, %c0_59] : memref<4x256x128xbf16, #tpu.memory_space<vmem>>, vector<1x256x128xbf16>
    %149 = vector.shape_cast %148 : vector<1x256x128xbf16> to vector<256x128xbf16>
    %cst_60 = arith.constant dense<0.000000e+00> : vector<16x128xf32>
    %150 = tpu.matmul %147, %149, %cst_60 {dimension_numbers = #tpu.dot_dimension_numbers<[1], [0], [0], [1], [0, 0, 1, 1], [], []>} : vector<16x256xbf16>, vector<256x128xbf16>, vector<16x128xf32> -> vector<16x128xf32>
    %c2_61 = arith.constant 2 : index
    %c0_62 = arith.constant 0 : index
    %c0_63 = arith.constant 0 : index
    %151 = vector.load %arg6[%c2_61, %c0_62, %c0_63] : memref<4x1x128xf32, #tpu.memory_space<vmem>>, vector<1x1x128xf32>
    %152 = vector.shape_cast %151 : vector<1x1x128xf32> to vector<1x128xf32>
    %153 = vector.broadcast %152 : vector<1x128xf32> to vector<16x128xf32>
    %154 = arith.addf %150, %153 : vector<16x128xf32>
    %155 = arith.addf %0, %154 : vector<16x128xf32>
    %cst_64 = arith.constant dense<0.000000e+00> : vector<16xf32>
    %156 = vector.multi_reduction <add>, %155, %cst_64 [1] : vector<16x128xf32> to vector<16xf32>
    %157 = vector.shape_cast %156 : vector<16xf32> to vector<16x1xf32>
    %cst_65 = arith.constant 1.280000e+02 : f32
    %158 = vector.broadcast %cst_65 : f32 to vector<16x1xf32>
    %159 = arith.divf %157, %158 : vector<16x1xf32>
    %160 = vector.broadcast %159 : vector<16x1xf32> to vector<16x128xf32>
    %161 = arith.subf %155, %160 : vector<16x128xf32>
    %162 = arith.mulf %161, %161 : vector<16x128xf32>
    %cst_66 = arith.constant dense<0.000000e+00> : vector<16xf32>
    %163 = vector.multi_reduction <add>, %162, %cst_66 [1] : vector<16x128xf32> to vector<16xf32>
    %164 = vector.shape_cast %163 : vector<16xf32> to vector<16x1xf32>
    %cst_67 = arith.constant 1.280000e+02 : f32
    %165 = vector.broadcast %cst_67 : f32 to vector<16x1xf32>
    %166 = arith.divf %164, %165 : vector<16x1xf32>
    %cst_68 = arith.constant 9.99999997E-7 : f32
    %167 = vector.broadcast %cst_68 : f32 to vector<16x1xf32>
    %168 = arith.addf %166, %167 : vector<16x1xf32>
    %169 = math.rsqrt %168 : vector<16x1xf32>
    %170 = vector.broadcast %169 : vector<16x1xf32> to vector<16x128xf32>
    %171 = arith.mulf %161, %170 : vector<16x128xf32>
    %c2_69 = arith.constant 2 : index
    %c0_70 = arith.constant 0 : index
    %c0_71 = arith.constant 0 : index
    %172 = vector.load %arg7[%c2_69, %c0_70, %c0_71] : memref<4x1x128xf32, #tpu.memory_space<vmem>>, vector<1x1x128xf32>
    %173 = vector.shape_cast %172 : vector<1x1x128xf32> to vector<1x128xf32>
    %174 = vector.broadcast %173 : vector<1x128xf32> to vector<16x128xf32>
    %175 = arith.mulf %171, %174 : vector<16x128xf32>
    %c2_72 = arith.constant 2 : index
    %c0_73 = arith.constant 0 : index
    %c0_74 = arith.constant 0 : index
    %176 = vector.load %arg8[%c2_72, %c0_73, %c0_74] : memref<4x1x128xf32, #tpu.memory_space<vmem>>, vector<1x1x128xf32>
    %177 = vector.shape_cast %176 : vector<1x1x128xf32> to vector<1x128xf32>
    %178 = vector.broadcast %177 : vector<1x128xf32> to vector<16x128xf32>
    %179 = arith.addf %175, %178 : vector<16x128xf32>
    %180 = arith.mulf %51, %179 : vector<16x128xf32>
    %181 = arith.addf %145, %180 : vector<16x128xf32>
    %182 = vector.extract_strided_slice %72 {offsets = [0, 768], sizes = [16, 256], strides = [1, 1]} : vector<16x1024xf32> to vector<16x256xf32>
    %183 = arith.truncf %182 : vector<16x256xf32> to vector<16x256xbf16>
    %c3 = arith.constant 3 : index
    %c0_75 = arith.constant 0 : index
    %c0_76 = arith.constant 0 : index
    %184 = vector.load %arg5[%c3, %c0_75, %c0_76] : memref<4x256x128xbf16, #tpu.memory_space<vmem>>, vector<1x256x128xbf16>
    %185 = vector.shape_cast %184 : vector<1x256x128xbf16> to vector<256x128xbf16>
    %cst_77 = arith.constant dense<0.000000e+00> : vector<16x128xf32>
    %186 = tpu.matmul %183, %185, %cst_77 {dimension_numbers = #tpu.dot_dimension_numbers<[1], [0], [0], [1], [0, 0, 1, 1], [], []>} : vector<16x256xbf16>, vector<256x128xbf16>, vector<16x128xf32> -> vector<16x128xf32>
    %c3_78 = arith.constant 3 : index
    %c0_79 = arith.constant 0 : index
    %c0_80 = arith.constant 0 : index
    %187 = vector.load %arg6[%c3_78, %c0_79, %c0_80] : memref<4x1x128xf32, #tpu.memory_space<vmem>>, vector<1x1x128xf32>
    %188 = vector.shape_cast %187 : vector<1x1x128xf32> to vector<1x128xf32>
    %189 = vector.broadcast %188 : vector<1x128xf32> to vector<16x128xf32>
    %190 = arith.addf %186, %189 : vector<16x128xf32>
    %191 = arith.addf %0, %190 : vector<16x128xf32>
    %cst_81 = arith.constant dense<0.000000e+00> : vector<16xf32>
    %192 = vector.multi_reduction <add>, %191, %cst_81 [1] : vector<16x128xf32> to vector<16xf32>
    %193 = vector.shape_cast %192 : vector<16xf32> to vector<16x1xf32>
    %cst_82 = arith.constant 1.280000e+02 : f32
    %194 = vector.broadcast %cst_82 : f32 to vector<16x1xf32>
    %195 = arith.divf %193, %194 : vector<16x1xf32>
    %196 = vector.broadcast %195 : vector<16x1xf32> to vector<16x128xf32>
    %197 = arith.subf %191, %196 : vector<16x128xf32>
    %198 = arith.mulf %197, %197 : vector<16x128xf32>
    %cst_83 = arith.constant dense<0.000000e+00> : vector<16xf32>
    %199 = vector.multi_reduction <add>, %198, %cst_83 [1] : vector<16x128xf32> to vector<16xf32>
    %200 = vector.shape_cast %199 : vector<16xf32> to vector<16x1xf32>
    %cst_84 = arith.constant 1.280000e+02 : f32
    %201 = vector.broadcast %cst_84 : f32 to vector<16x1xf32>
    %202 = arith.divf %200, %201 : vector<16x1xf32>
    %cst_85 = arith.constant 9.99999997E-7 : f32
    %203 = vector.broadcast %cst_85 : f32 to vector<16x1xf32>
    %204 = arith.addf %202, %203 : vector<16x1xf32>
    %205 = math.rsqrt %204 : vector<16x1xf32>
    %206 = vector.broadcast %205 : vector<16x1xf32> to vector<16x128xf32>
    %207 = arith.mulf %197, %206 : vector<16x128xf32>
    %c3_86 = arith.constant 3 : index
    %c0_87 = arith.constant 0 : index
    %c0_88 = arith.constant 0 : index
    %208 = vector.load %arg7[%c3_86, %c0_87, %c0_88] : memref<4x1x128xf32, #tpu.memory_space<vmem>>, vector<1x1x128xf32>
    %209 = vector.shape_cast %208 : vector<1x1x128xf32> to vector<1x128xf32>
    %210 = vector.broadcast %209 : vector<1x128xf32> to vector<16x128xf32>
    %211 = arith.mulf %207, %210 : vector<16x128xf32>
    %c3_89 = arith.constant 3 : index
    %c0_90 = arith.constant 0 : index
    %c0_91 = arith.constant 0 : index
    %212 = vector.load %arg8[%c3_89, %c0_90, %c0_91] : memref<4x1x128xf32, #tpu.memory_space<vmem>>, vector<1x1x128xf32>
    %213 = vector.shape_cast %212 : vector<1x1x128xf32> to vector<1x128xf32>
    %214 = vector.broadcast %213 : vector<1x128xf32> to vector<16x128xf32>
    %215 = arith.addf %211, %214 : vector<16x128xf32>
    %216 = arith.mulf %54, %215 : vector<16x128xf32>
    %217 = arith.addf %181, %216 : vector<16x128xf32>
    %c0_92 = arith.constant 0 : index
    %c0_93 = arith.constant 0 : index
    %218 = vector.load %arg9[%c0_92, %c0_93] : memref<16x128xf32, #tpu.memory_space<vmem>>, vector<16x128xf32>
    tpu.vector_store %arg9[%c0_92, %c0_93], %217 {strides = array<i32>} : memref<16x128xf32, #tpu.memory_space<vmem>>, vector<16x128xf32>,
    return
  }
  func.func @transform_0(%arg0: i32) -> (i32, i32) {
    %c0_i32 = arith.constant 0 : i32
    %c0_i32_0 = arith.constant 0 : i32
    return %arg0, %c0_i32 : i32, i32
  }
  func.func @transform_1(%arg0: i32) -> (i32, i32) {
    %c0_i32 = arith.constant 0 : i32
    %c0_i32_0 = arith.constant 0 : i32
    %c0_i32_1 = arith.constant 0 : i32
    return %c0_i32, %c0_i32_0 : i32, i32
  }
  func.func @transform_2(%arg0: i32) -> (i32, i32) {
    %c0_i32 = arith.constant 0 : i32
    %c0_i32_0 = arith.constant 0 : i32
    %c0_i32_1 = arith.constant 0 : i32
    return %c0_i32, %c0_i32_0 : i32, i32
  }
  func.func @transform_3(%arg0: i32) -> (i32, i32) {
    %c0_i32 = arith.constant 0 : i32
    %c0_i32_0 = arith.constant 0 : i32
    %c0_i32_1 = arith.constant 0 : i32
    return %c0_i32, %c0_i32_0 : i32, i32
  }
  func.func @transform_4(%arg0: i32) -> (i32, i32, i32) {
    %c0_i32 = arith.constant 0 : i32
    %c0_i32_0 = arith.constant 0 : i32
    %c0_i32_1 = arith.constant 0 : i32
    %c0_i32_2 = arith.constant 0 : i32
    return %c0_i32, %c0_i32_0, %c0_i32_1 : i32, i32, i32
  }
  func.func @transform_5(%arg0: i32) -> (i32, i32, i32) {
    %c0_i32 = arith.constant 0 : i32
    %c0_i32_0 = arith.constant 0 : i32
    %c0_i32_1 = arith.constant 0 : i32
    %c0_i32_2 = arith.constant 0 : i32
    return %c0_i32, %c0_i32_0, %c0_i32_1 : i32, i32, i32
  }
  func.func @transform_6(%arg0: i32) -> (i32, i32, i32) {
    %c0_i32 = arith.constant 0 : i32
    %c0_i32_0 = arith.constant 0 : i32
    %c0_i32_1 = arith.constant 0 : i32
    %c0_i32_2 = arith.constant 0 : i32
    return %c0_i32, %c0_i32_0, %c0_i32_1 : i32, i32, i32
  }
  func.func @transform_7(%arg0: i32) -> (i32, i32, i32) {
    %c0_i32 = arith.constant 0 : i32
    %c0_i32_0 = arith.constant 0 : i32
    %c0_i32_1 = arith.constant 0 : i32
    %c0_i32_2 = arith.constant 0 : i32
    return %c0_i32, %c0_i32_0, %c0_i32_1 : i32, i32, i32
  }
  func.func @transform_8(%arg0: i32) -> (i32, i32) {
    %c0_i32 = arith.constant 0 : i32
    %c0_i32_0 = arith.constant 0 : i32
    return %arg0, %c0_i32 : i32, i32
  }
}

</mosaic_0001>

<bundles_post_ra>
// kernel: tpu_custom_call.1
= control target key start
LH: loop header
LB: loop body
LE: loop exit
PB: predicated region body
PF: predicated region fallthrough
CT: control target
= control target key end

     0   :  { %13 = vsyncpa [#allocation3], 0  ;;  %s3547_s0 = inlined_call_operand.vmem [shape: f32[32,128], index: 0, kind: input, shape index: {}]   ;;  %s3548_s1 = inlined_call_operand.vmem [shape: f32[128,4], index: 1, kind: input, shape index: {}]   ;;  %s3549_s2 = inlined_call_operand.hbm [shape: bf16[128,1024], index: 2, kind: input, shape index: {}]   ;;  %s3550_s3 = inlined_call_operand.vmem [shape: f32[1,1024], index: 3, kind: input, shape index: {}]   ;;  %s3551_s4 = inlined_call_operand.hbm [shape: bf16[4,256,128], index: 4, kind: input, shape index: {}]   ;;  %s3552_s5 = inlined_call_operand.vmem [shape: f32[4,1,128], index: 5, kind: input, shape index: {}]   ;;  %s3553_s6 = inlined_call_operand.vmem [shape: f32[4,1,128], index: 6, kind: input, shape index: {}]   ;;  %s3554_s7 = inlined_call_operand.vmem [shape: f32[4,1,128], index: 7, kind: input, shape index: {}]   ;;  %s3555_s8 = inlined_call_operand.hbm [shape: f32[32,128], index: 8, kind: output, shape index: {}]  }
   0x1   :  { %14 = vsyncpa [#allocation6], 0 }
   0x2   :  { %15 = vsyncpa [#allocation4], 0 }
   0x3   :  { %17 = vsyncpa [#allocation4 + $0x1], 0  ;;  %s3021_s27 = smov 0   ;;  %s3023_s28 = smov 0  }
   0x4   :  { %s3025_s29 = smov 0   ;;  %s3027_s30 = smov 0  }
   0x5 LB: > { %s3042_s9 = sadd.s32 4294967295, %s2961_s30   ;;  %s2334_s10 = sadd.s32 4294967294, %s2961_s30   ;;  %s2961_s30 = sphi %s3027_s30, %s3573_s30   ;;  %s2957_s29 = sphi %s3025_s29, %s3572_s29   ;;  %s2953_s28 = sphi %s3023_s28, %s3571_s28   ;;  %s2949_s27 = sphi %s3021_s27, %s3570_s27  }
   0x6   : > { %s3046_s11 = sadd.s32 1, %s2961_s30   ;;  %s203_s12 = sadd.s32 1, %s2957_s29 }
   0x7   : > { %s200_s13 = ssub.s32 %s2961_s30, %s3046_s11  ;;  %p213_p0 = scmp.ne.s32.totalorder %s2957_s29, %s2953_s28 }
   0x8   : > { %p201_p1 = scmp.eq.s32.totalorder %s200_s13, 0  ;;  %p214_p2 = scmp.eq.s32.totalorder %s3042_s9, 1 }
   0x9   : > { %p219_p3 = scmp.ne.s32.totalorder %s2953_s28, %s2949_s27  ;;  %p220_p4 = scmp.eq.s32.totalorder %s2334_s10, 1 }
   0xa   : > { %s3057_s14 = scalar_select %p201_p1, %s2957_s29, %s203_s12  }
   0xb   : > { %p3059_p5 = por %p214_p2, %p213_p0  ;;  %p3063_p6 = por %p220_p4, %p219_p3 }
   0xc   : > { %p2335_p7 = scmp.ge.s32.totalorder %s2961_s30, 1  ;;  %p227_p8 = scmp.lt.s32.totalorder %s2961_s30, 3 }
   0xd   : > { %s3558_s16 = scalar_select %p3063_p6, 1, 0 }
   0xe   : > { %p3556_p9 = scmp.eq.s32.totalorder %s3042_s9, 0  ;;  %p3070_p10 = pnand %p2335_p7, %p227_p8 }
   0xf   : > { %s2963_s18 = smov [#allocation2]   ;;  %s2964_s21 = smov [#allocation5]  }
  0x10   : > { %s242_s19 = sshll.u32 %s2963_s18, 4  ;;  %p2651_p11 = pneg %p3070_p10  ;;  %s243_s19 = int_to_ptr.vmem [resolvable:$true] %s242_s19 }
  0x11   : > { %s258_s22 = sshll.u32 %s2964_s21, 4  ;;  %s2852_s23 = scalar_lea.vmem %s243_s19, 8192  ;;  %s259_s22 = int_to_ptr.vmem [resolvable:$true] %s258_s22 }
  0x12   : > { %p3078_p12 = pnand %p3556_p9, %p2651_p11  ;;  %p2853_p0 = scmp.ne.s32.totalorder %s243_s19, %s2852_s23 }
  0x13   : > { %p2860_p3 = scmp.lt.s32.totalorder %s243_s19, %s243_s19  ;;  %p2861_p4 = scmp.lt.s32.totalorder %s2852_s23, %s2852_s23 }
  0x14   : > { %p2843_p13 = pneg %p3078_p12 }
  0x15   : > { %p2862_p7 = por %p2861_p4, %p2860_p3 }
  0x16   : > { %p2855_p1 = pnand %p2853_p0, %p2843_p13 }
  0x18   : > { %p2856_p2 = pneg %p2855_p1 }
  0x1a   : > { %p2863_p8 = pnand %p2862_p7, %p2856_p2 }
  0x1c   : > { %2866 = shalt.err (!%p2863_p8)
}
  0x1d   : > { %s2965_s24 = smov 512   ;;  %s2966_s25 = smov 32  }
  0x1e   : > { %2654 = dma.hbm_to_vmem [thread:$0]  (!%p3078_p12), %s3549_s2, 8192, %s243_s19, [#allocation3], %s2965_s24, %s2965_s24, %s2966_s25  }
  0x1f   : > { %s2878_s12 = scalar_lea.vmem %s259_s22, 8192  ;;  %p2886_p9 = scmp.lt.s32.totalorder %s259_s22, %s259_s22 }
  0x20   : > { %p2879_p11 = scmp.ne.s32.totalorder %s259_s22, %s2878_s12  ;;  %p2887_p6 = scmp.lt.s32.totalorder %s2878_s12, %s2878_s12 }
  0x22   : > { %p2881_p0 = pnand %p2879_p11, %p2843_p13  ;;  %p2888_p3 = por %p2887_p6, %p2886_p9 }
  0x24   : > { %p2882_p1 = pneg %p2881_p0 }
  0x26   : > { %p2889_p2 = pnand %p2888_p3, %p2882_p1 }
  0x28   : > { %2892 = shalt.err (!%p2889_p2)
}
  0x29   : > { %s2967_s13 = smov 64   ;;  %s2968_s18 = smov 4  }
  0x2a   : > { %2657 = dma.hbm_to_vmem [thread:$0]  (!%p3078_p12), %s3551_s4, 8192, %s259_s22, [#allocation6], %s2967_s13, %s2967_s13, %s2968_s18  }
  0x2b   : > { %292 = sbr.rel (%p3070_p10) target bundleno = 1629 (0x65d), region = 52  ;;  %p3561_p4 = scmp.eq.s32.totalorder (!%p3070_p10), %s3042_s9, 0 }
  0x30   : > { %2936 = dma.done.wait (%p3561_p4), [#allocation3], 8192   ;;  %p3562_p13 = pmov %p3561_p4 }
  0x31   : > { %p3563_p6 = pmov %p3561_p4 }
  0x32   : > { %2938 = vsyncadd (%p3562_p13), [#allocation3], 4294959104 }
  0x33   : > { %2940 = dma.done.wait (%p3563_p6), [#allocation6], 8192   ;;  %p3564_p9 = pmov %p3561_p4 }
  0x34   : > { %s2343_s19 = sshll.u32 %s3042_s9, 1  ;;  %v356_v0 = vld [vmem:[%s3548_s1 + $0x78] sm:$0xff]  ;;  %v355_v1 = vld [vmem:[%s3548_s1 + $0x70] sm:$0xff]  ;;  %v354_v2 = vld [vmem:[%s3548_s1 + $0x68] sm:$0xff]  ;;  %vm434_vm0 = vcmask 31744   ;;  %v432_v22 = vlaneseq  ;;  %v2969_v42 = vmov 0  }
  0x35   : > { %2942 = vsyncadd (%p3564_p9), [#allocation6], 4294959104  ;;  %p331_p7 = scmp.lt.s32.totalorder %s2343_s19, 3  ;;  %2606 = vmatprep.subr.mxu0 %v356_v0  ;;  %v353_v3 = vld [vmem:[%s3548_s1 + $0x60] sm:$0xff]  ;;  %v352_v4 = vld [vmem:[%s3548_s1 + $0x58] sm:$0xff]  ;;  %1041 = vmatprep.mubr.bf16.mxu1 %v2969_v42  ;;  %s327_s21 = sand.u32 1, %s2953_s28  }
  0x36   : > { %2607 = vmatpush3.msra.mxu0 %v356_v0  ;;  %v351_v6 = vld [vmem:[%s3548_s1 + $0x50] sm:$0xff]  ;;  %v350_v7 = vld [vmem:[%s3548_s1 + $0x48] sm:$0xff]  ;;  %v349_v8 = vld [vmem:[%s3548_s1 + $0x40] sm:$0xff]  ;;  %v3181_v23 = vand.u32 127, %v432_v22  ;;  %2711 = vset.pattern.permute.xlu0 %v2969_v42  ;;  %s2342_s22 = sshll.u32 %s327_s21, 4  ;;  %s3507_s12 = scalar_lea.sflag [#allocation4], %s327_s21 }
  0x37   : > { %s3575_s19 = smov (!%p331_p7, %s2343_s19), 3  ;;  %2608 = vmatprep.subr.mxu0 %v355_v1  ;;  %v348_v9 = vld [vmem:[%s3548_s1 + $0x38] sm:$0xff]  ;;  %v347_v10 = vld [vmem:[%s3548_s1 + $0x30] sm:$0xff]  ;;  %v346_v11 = vld [vmem:[%s3548_s1 + $0x28] sm:$0xff]  ;;  %2712 = vset.pattern.permute.xlu1 %v2969_v42  ;;  %s329_s17 = scalar_lea.vmem [#allocation7], %s2342_s22 }
  0x38   : > { %s2344_s20 = sshll.u32 %s3575_s19, 3  ;;  %2609 = vmatpush3.msra.mxu0 %v355_v1  ;;  %v345_v12 = vld [vmem:[%s3548_s1 + $0x20] sm:$0xff]  ;;  %v344_v13 = vld [vmem:[%s3548_s1 + $0x18] sm:$0xff]  ;;  %v343_v14 = vld [vmem:[%s3548_s1 + $0x10] sm:$0xff]  ;;  %s2250_s24 = sshll.u32 %s329_s17, 4  ;;  %s3498_s24 = int_to_ptr.vmem [resolvable:$true] %s2250_s24 }
  0x39   : > { %s3123_s18 = scalar_lea.vmem %s3547_s0, %s2344_s20  ;;  %2610 = vmatprep.subr.mxu0 %v354_v2  ;;  %v342_v15 = vld [vmem:[%s3548_s1 + $0x8] sm:$0xff]  ;;  %v341_v16 = vld [vmem:[%s3548_s1] sm:$0xff]  ;;  %s2499_s20 = sshll.u32 %s3042_s9, 8 }
  0x3a   : > { %v3132_v5 = vld [vmem:[%s3123_s18] sm:$0xff]  ;;  %2611 = vmatpush3.msra.mxu0 %v354_v2  ;;  %v3169_v17 = vld [vmem:[%s3123_s18 + $0x8] sm:$0xff]  ;;  %s3503_s10 = scalar_lea.hbm %s3555_s8, %s2499_s20  ;;  %s2893_s13 = scalar_lea.vmem %s3498_s24, 256 }
  0x3b   : > { %2638 = vmatprep.mubr.f32.mxu0 %v3132_v5  ;;  %2612 = vmatprep.subr.mxu0 %v353_v3  ;;  %v639_v34 = vld [vmem:[#allocation2 + $0x1c0] sm:$0xff]  ;;  %v640_v40 = vld [vmem:[#allocation2 + $0x1c8] sm:$0xff]  ;;  %p2894_p10 = scmp.ne.s32.totalorder %s3498_s24, %s2893_s13  ;;  %s2973_s9 = smov [#allocation7]  }
  0x3c   : > { %2613 = vmatpush3.msra.mxu0 %v353_v3  ;;  %v643_v35 = vld [vmem:[#allocation2 + $0x1e0] sm:$0xff]  ;;  %v644_v41 = vld [vmem:[#allocation2 + $0x1e8] sm:$0xff] }
  0x3d   : > { %2614 = vmatprep.subr.mxu0 %v352_v4  ;;  %v631_v36 = vld [vmem:[#allocation2 + $0x180] sm:$0xff]  ;;  %v2402_v37 = vcombine.high %v639_v34, %v643_v35  ;;  %v2401_v38 = vcombine.low %v639_v34, %v643_v35  ;;  %v2403_v44 = vcombine.low %v640_v40, %v644_v41  ;;  %v2404_v45 = vcombine.high %v640_v40, %v644_v41  ;;  %v632_v48 = vld [vmem:[#allocation2 + $0x188] sm:$0xff]  ;;  %p2895_p12 = pnand %p2894_p10, %p3059_p5 }
  0x3e   : > { %2615 = vmatpush3.msra.mxu0 %v352_v4  ;;  %v635_v39 = vld [vmem:[#allocation2 + $0x1a0] sm:$0xff]  ;;  %v636_v49 = vld [vmem:[#allocation2 + $0x1a8] sm:$0xff] }
  0x3f   : > { %2616 = vmatprep.subr.mxu0 %v351_v6  ;;  %v2394_v43 = vcombine.high %v631_v36, %v635_v39  ;;  %v623_v46 = vld [vmem:[#allocation2 + $0x140] sm:$0xff]  ;;  %1009 = vmatprep.subr.bf16.mxu1 %v2402_v37  ;;  %v2393_v50 = vcombine.low %v631_v36, %v635_v39  ;;  %v2396_v51 = vcombine.high %v632_v48, %v636_v49  ;;  %v624_v52 = vld [vmem:[#allocation2 + $0x148] sm:$0xff]  ;;  %p2896_p8 = pneg %p2895_p12 }
  0x40   : > { %2617 = vmatpush3.msra.mxu0 %v351_v6  ;;  %v627_v47 = vld [vmem:[#allocation2 + $0x160] sm:$0xff]  ;;  %1010 = vmatpush1.bf16.msra.mxu1 %v2401_v38  ;;  %v628_v53 = vld [vmem:[#allocation2 + $0x168] sm:$0xff]  ;;  %v2395_v55 = vcombine.low %v632_v48, %v636_v49 }
  0x41   : > { %2618 = vmatprep.subr.mxu0 %v350_v7  ;;  %1011 = vmatprep.subr.bf16.mxu1 %v2394_v43  ;;  %v2386_v54 = vcombine.high %v623_v46, %v627_v47  ;;  %v615_v56 = vld [vmem:[#allocation2 + $0x100] sm:$0xff]  ;;  %v2388_v58 = vcombine.high %v624_v52, %v628_v53  ;;  %v616_v59 = vld [vmem:[#allocation2 + $0x108] sm:$0xff]  ;;  %v2385_v61 = vcombine.low %v623_v46, %v627_v47  ;;  %v642_v46 = vld [vmem:[#allocation2 + $0x1d8] sm:$0xff] }
  0x42   : > { %2619 = vmatpush3.msra.mxu0 %v350_v7  ;;  %v619_v57 = vld [vmem:[#allocation2 + $0x120] sm:$0xff]  ;;  %v620_v60 = vld [vmem:[#allocation2 + $0x128] sm:$0xff]  ;;  %v2387_v63 = vcombine.low %v624_v52, %v628_v53  ;;  %v646_v47 = vld [vmem:[#allocation2 + $0x1f8] sm:$0xff] }
  0x43   : > { %2620 = vmatprep.subr.mxu0 %v349_v8  ;;  %v2378_v62 = vcombine.high %v615_v56, %v619_v57  ;;  %v607_v0 = vld [vmem:[#allocation2 + $0xc0] sm:$0xff]  ;;  %v2380_v2 = vcombine.high %v616_v59, %v620_v60  ;;  %v608_v3 = vld [vmem:[#allocation2 + $0xc8] sm:$0xff]  ;;  %v2377_v6 = vcombine.low %v615_v56, %v619_v57  ;;  %v637_v52 = vld [vmem:[#allocation2 + $0x1b0] sm:$0xff]  ;;  %v2408_v53 = vcombine.high %v642_v46, %v646_v47 }
  0x44   : > { %2621 = vmatpush3.msra.mxu0 %v349_v8  ;;  %1012 = vmatpush1.bf16.msra.mxu1 %v2393_v50  ;;  %v611_v1 = vld [vmem:[#allocation2 + $0xe0] sm:$0xff]  ;;  %v612_v4 = vld [vmem:[#allocation2 + $0xe8] sm:$0xff]  ;;  %v2379_v8 = vcombine.low %v616_v59, %v620_v60  ;;  %v638_v56 = vld [vmem:[#allocation2 + $0x1b8] sm:$0xff]  ;;  %v2407_v59 = vcombine.low %v642_v46, %v646_v47 }
  0x45   : > { %2622 = vmatprep.subr.mxu0 %v348_v9  ;;  %1013 = vmatprep.subr.bf16.mxu1 %v2386_v54  ;;  %v2370_v7 = vcombine.high %v607_v0, %v611_v1  ;;  %v583_v34 = vld [vmem:[#allocation2] sm:$0xff]  ;;  %v584_v37 = vld [vmem:[#allocation2 + $0x8] sm:$0xff]  ;;  %v3207_v54 = vpack.c.bf16 %v3169_v17, %v3132_v5  ;;  %v625_v60 = vld [vmem:[#allocation2 + $0x150] sm:$0xff] }
  0x46   : > { %2623 = vmatpush3.msra.mxu0 %v348_v9  ;;  %v599_v9 = vld [vmem:[#allocation2 + $0x80] sm:$0xff]  ;;  %v588_v38 = vld [vmem:[#allocation2 + $0x28] sm:$0xff]  ;;  %v585_v47 = vld [vmem:[#allocation2 + $0x10] sm:$0xff] }
  0x47   : > { %2624 = vmatprep.subr.mxu0 %v347_v10  ;;  %v587_v35 = vld [vmem:[#allocation2 + $0x20] sm:$0xff]  ;;  %v2348_v43 = vcombine.high %v584_v37, %v588_v38  ;;  %v2347_v49 = vcombine.low %v584_v37, %v588_v38  ;;  %v593_v38 = vld [vmem:[#allocation2 + $0x50] sm:$0xff] }
  0x48   : > { %2625 = vmatpush3.msra.mxu0 %v347_v10  ;;  %1014 = vmatpush1.bf16.msra.mxu1 %v2385_v61  ;;  %v603_v10 = vld [vmem:[#allocation2 + $0xa0] sm:$0xff]  ;;  %v2346_v40 = vcombine.high %v583_v34, %v587_v35  ;;  %v2345_v48 = vcombine.low %v583_v34, %v587_v35  ;;  %v629_v61 = vld [vmem:[#allocation2 + $0x170] sm:$0xff]  ;;  %v614_v35 = vld [vmem:[#allocation2 + $0xf8] sm:$0xff] }
  0x49   : > { %2626 = vmatprep.subr.mxu0 %v346_v11  ;;  %1015 = vmatprep.subr.bf16.mxu1 %v2378_v62  ;;  %v2390_v5 = vcombine.high %v625_v60, %v629_v61 }
  0x4a   : > { %2627 = vmatpush3.msra.mxu0 %v346_v11  ;;  %v2372_v11 = vcombine.high %v608_v3, %v612_v4 }
  0x4b   : > { %2628 = vmatprep.subr.mxu0 %v345_v12 }
  0x4c   : > { %2629 = vmatpush3.msra.mxu0 %v345_v12  ;;  %v600_v12 = vld [vmem:[#allocation2 + $0x88] sm:$0xff]  ;;  %1016 = vmatpush1.bf16.msra.mxu1 %v2377_v6  ;;  %v2389_v6 = vcombine.low %v625_v60, %v629_v61 }
  0x4d   : > { %2630 = vmatprep.subr.mxu0 %v344_v13  ;;  %1017 = vmatprep.subr.bf16.mxu1 %v2370_v7 }
  0x4e   : > { %2631 = vmatpush3.msra.mxu0 %v344_v13  ;;  %v604_v13 = vld [vmem:[#allocation2 + $0xa8] sm:$0xff] }
  0x4f   : > { %2632 = vmatprep.subr.mxu0 %v343_v14 }
  0x50   : > { %2633 = vmatpush3.msra.mxu0 %v343_v14  ;;  %v2369_v14 = vcombine.low %v607_v0, %v611_v1  ;;  %v630_v0 = vld [vmem:[#allocation2 + $0x178] sm:$0xff] }
  0x51   : > { %2634 = vmatprep.subr.mxu0 %v342_v15 }
  0x52   : > { %2635 = vmatpush3.msra.mxu0 %v342_v15  ;;  %v2362_v15 = vcombine.high %v599_v9, %v603_v10  ;;  %1018 = vmatpush1.bf16.msra.mxu1 %v2369_v14 }
  0x53   : > { %2636 = vmatprep.subr.mxu0 %v341_v16 }
  0x54   : > { %2637 = vmatpush3.msra.mxu0 %v341_v16  ;;  %v2371_v16 = vcombine.low %v608_v3, %v612_v4  ;;  %1019 = vmatprep.subr.bf16.mxu1 %v2362_v15  ;;  %v621_v3 = vld [vmem:[#allocation2 + $0x130] sm:$0xff] }
  0x55   : > { %2639 = vmatmul.mubr.f32.vlgmr.msra.gmra.mxu0 %v3169_v17  ;;  %1052 = vmatprep.subr.bf16.mxu0 %v2404_v45  ;;  %v645_v45 = vld [vmem:[#allocation2 + $0x1f0] sm:$0xff] }
  0x56   : > { %1084 = vmatprep.mubr.bf16.mxu0 %v2969_v42  ;;  %1053 = vmatpush1.bf16.msra.mxu0 %v2403_v44  ;;  %v641_v44 = vld [vmem:[#allocation2 + $0x1d0] sm:$0xff] }
  0x57   : > { %1054 = vmatprep.subr.bf16.mxu0 %v2396_v51  ;;  %v2406_v50 = vcombine.high %v641_v44, %v645_v45  ;;  %v633_v51 = vld [vmem:[#allocation2 + $0x190] sm:$0xff]  ;;  %v2405_v57 = vcombine.low %v641_v44, %v645_v45  ;;  %v606_v44 = vld [vmem:[#allocation2 + $0xb8] sm:$0xff] }
  0x58   : > { %v2397_v1 = vcombine.low %v633_v51, %v637_v52 }
  0x5a   : > { %1055 = vmatpush1.bf16.msra.mxu0 %v2395_v55  ;;  %v634_v55 = vld [vmem:[#allocation2 + $0x198] sm:$0xff] }
  0x5b   : > { %1056 = vmatprep.subr.bf16.mxu0 %v2388_v58  ;;  %v2398_v58 = vcombine.high %v633_v51, %v637_v52  ;;  %v2400_v62 = vcombine.high %v634_v55, %v638_v56  ;;  %v2399_v17 = vcombine.low %v634_v55, %v638_v56  ;;  %v598_v52 = vld [vmem:[#allocation2 + $0x78] sm:$0xff] }
  0x5c   : > { %v590_v55 = vld [vmem:[#allocation2 + $0x38] sm:$0xff] }
  0x5e   : > { %1057 = vmatpush1.bf16.msra.mxu0 %v2387_v63  ;;  %v626_v63 = vld [vmem:[#allocation2 + $0x158] sm:$0xff] }
  0x5f   : > { %1058 = vmatprep.subr.bf16.mxu0 %v2380_v2  ;;  %v617_v2 = vld [vmem:[#allocation2 + $0x110] sm:$0xff]  ;;  %v2392_v4 = vcombine.high %v626_v63, %v630_v0 }
  0x60   : > { %v2382_v7 = vcombine.high %v617_v2, %v621_v3 }
  0x62   : > { %1059 = vmatpush1.bf16.msra.mxu0 %v2379_v8  ;;  %v2391_v8 = vcombine.low %v626_v63, %v630_v0 }
  0x63   : > { %1060 = vmatprep.subr.bf16.mxu0 %v2372_v11 }
  0x66   : > { %1061 = vmatpush1.bf16.msra.mxu0 %v2371_v16 }
 0x115   : > { %v3172_v18 = vpop.f32.mrf.mxu0 }
 0x116   : > { %v438_v21 = vsel %vm434_vm0, %v3172_v18, -inf }
 0x117   : > { %v3174_v19 = vpop.f32.mrf.mxu0 }
 0x118   : > { %v435_v20 = vsel %vm434_vm0, %v3174_v19, -inf }
 0x119   : > { %436 = vmax.xlane.f32.xlu0 %v435_v20  ;;  %v591_v20 = vld [vmem:[#allocation2 + $0x40] sm:$0xff] }
 0x11d   : > { %439 = vmax.xlane.f32.xlu0 %v438_v21  ;;  %v595_v21 = vld [vmem:[#allocation2 + $0x60] sm:$0xff] }
 0x11e   : > { %v2353_v39 = vcombine.low %v591_v20, %v595_v21 }
 0x1a2   : > { %v437_v24 = vpop.xlane.xlu0 %436 }
 0x1a3   : > { %vm441_vm1 = vcmp.eq.f32.partialorder %v3174_v19, %v437_v24  ;;  %v2364_v24 = vcombine.high %v600_v12, %v604_v13 }
 0x1a4   : > { %v443_v25 = vsel %vm441_vm1, %v3181_v23, 4 }
 0x1a5   : > { %v3186_v26 = vsel %vm434_vm0, %v443_v25, 2147483647  ;;  %v592_v25 = vld [vmem:[#allocation2 + $0x48] sm:$0xff]  ;;  %1062 = vmatprep.subr.bf16.mxu0 %v2364_v24 }
 0x1a6   : > { %v440_v27 = vpop.xlane.xlu0 %439  ;;  %v447_v28 = vshra.s32 %v3186_v26, 16 }
 0x1a7   : > { %vm442_vm2 = vcmp.eq.f32.partialorder %v3172_v18, %v440_v27  ;;  %v596_v27 = vld [vmem:[#allocation2 + $0x68] sm:$0xff] }
 0x1a8   : > { %v444_v29 = vsel %vm442_vm2, %v3181_v23, 4  ;;  %v3191_v30 = vcvt.s32.f32 %v447_v28  ;;  %v2361_v28 = vcombine.low %v599_v9, %v603_v10  ;;  %v2356_v36 = vcombine.high %v592_v25, %v596_v27 }
 0x1a9   : > { %v3194_v31 = vsel %vm434_vm0, %v444_v29, 2147483647  ;;  %v2354_v29 = vcombine.high %v591_v20, %v595_v21  ;;  %v2355_v41 = vcombine.low %v592_v25, %v596_v27  ;;  %v2381_v9 = vcombine.low %v617_v2, %v621_v3  ;;  %v609_v20 = vld [vmem:[#allocation2 + $0xd0] sm:$0xff]  ;;  %v618_v21 = vld [vmem:[#allocation2 + $0x118] sm:$0xff] }
 0x1aa   : > { %450 = vmin.xlane.f32.xlu1 %v3191_v30  ;;  %v462_v32 = vshra.s32 %v3194_v31, 16  ;;  %1020 = vmatpush1.bf16.msra.mxu1 %v2361_v28  ;;  %v446_v10 = vand.u32 65535, %v3186_v26  ;;  %v613_v26 = vld [vmem:[#allocation2 + $0xf0] sm:$0xff]  ;;  %v622_v25 = vld [vmem:[#allocation2 + $0x138] sm:$0xff] }
 0x1ab   : > { %1021 = vmatprep.subr.bf16.mxu1 %v2354_v29  ;;  %v2374_v24 = vcombine.high %v609_v20, %v613_v26  ;;  %v2373_v27 = vcombine.low %v609_v20, %v613_v26  ;;  %v2384_v28 = vcombine.high %v618_v21, %v622_v25  ;;  %v605_v29 = vld [vmem:[#allocation2 + $0xb0] sm:$0xff] }
 0x1ac   : > { %v3198_v33 = vcvt.s32.f32 %v462_v32  ;;  %v2363_v32 = vcombine.low %v600_v12, %v604_v13  ;;  %v448_v12 = vcvt.s32.f32 %v446_v10  ;;  %v461_v13 = vand.u32 65535, %v3194_v31 }
 0x1ad   : > { %v2383_v31 = vcombine.low %v618_v21, %v622_v25  ;;  %v2723_v25 = vld [vmem:[#allocation5 + $0x30] sm:$0xff]  }
 0x1ae   : > { %465 = vmin.xlane.f32.xlu1 %v3198_v33  ;;  %1063 = vmatpush1.bf16.msra.mxu0 %v2363_v32  ;;  %v463_v15 = vcvt.s32.f32 %v461_v13  ;;  %v610_v32 = vld [vmem:[#allocation2 + $0xd8] sm:$0xff]  ;;  %v3257_v13 = vld [vmem:[%s3550_s3] sm:$0xff] }
 0x1af   : > { %1064 = vmatprep.subr.bf16.mxu0 %v2356_v36  ;;  %1022 = vmatpush1.bf16.msra.mxu1 %v2353_v39  ;;  %v2375_v36 = vcombine.low %v610_v32, %v614_v35  ;;  %v2376_v37 = vcombine.high %v610_v32, %v614_v35  ;;  %v597_v39 = vld [vmem:[#allocation2 + $0x70] sm:$0xff]  ;;  %v2725_v35 = vld [vmem:[#allocation5 + $0x68] sm:$0xff]  }
 0x1b0   : > { %1023 = vmatprep.subr.bf16.mxu1 %v2346_v40  ;;  %v602_v40 = vld [vmem:[#allocation2 + $0x98] sm:$0xff] }
 0x1b1   : > { %v2367_v45 = vcombine.low %v602_v40, %v606_v44  ;;  %v2368_v46 = vcombine.high %v602_v40, %v606_v44 }
 0x1b2   : > { %1065 = vmatpush1.bf16.msra.mxu0 %v2355_v41  ;;  %v2357_v41 = vcombine.low %v593_v38, %v597_v39 }
 0x1b3   : > { %1066 = vmatprep.subr.bf16.mxu0 %v2348_v43  ;;  %1024 = vmatpush1.bf16.msra.mxu1 %v2345_v48  ;;  %v2358_v43 = vcombine.high %v593_v38, %v597_v39  ;;  %v589_v48 = vld [vmem:[#allocation2 + $0x30] sm:$0xff] }
 0x1b4   : > { %1095 = vmatprep.subr.bf16.mxu1 %v2406_v50  ;;  %v2349_v50 = vcombine.low %v585_v47, %v589_v48  ;;  %v2350_v51 = vcombine.high %v585_v47, %v589_v48  ;;  %v2727_v47 = vld [vmem:[#allocation5 + $0x28] sm:$0xff]  }
 0x1b6   : > { %1067 = vmatpush1.bf16.msra.mxu0 %v2347_v49  ;;  %1042 = vmatmul.mubr.bf16.vlgmr.msra.gmra.mxu1 %v3207_v54  ;;  %v594_v49 = vld [vmem:[#allocation2 + $0x58] sm:$0xff] }
 0x1b7   : > { %1138 = vmatprep.subr.bf16.mxu0 %v2408_v53  ;;  %1096 = vmatpush1.bf16.msra.mxu1 %v2405_v57  ;;  %v586_v53 = vld [vmem:[#allocation2 + $0x18] sm:$0xff]  ;;  %v2359_v56 = vcombine.low %v594_v49, %v598_v52  ;;  %v2360_v57 = vcombine.high %v594_v49, %v598_v52 }
 0x1b8   : > { %1097 = vmatprep.subr.bf16.mxu1 %v2398_v58  ;;  %1127 = vmatprep.mubr.bf16.mxu1 %v2969_v42  ;;  %v2352_v58 = vcombine.high %v586_v53, %v590_v55 }
 0x1b9   : > { %1085 = vmatmul.mubr.bf16.vlgmr.msra.gmra.mxu0 %v3207_v54 }
 0x1ba   : > { %1139 = vmatpush1.bf16.msra.mxu0 %v2407_v59  ;;  %1170 = vmatprep.mubr.bf16.mxu0 %v2969_v42  ;;  %v2351_v59 = vcombine.low %v586_v53, %v590_v55 }
 0x1bb   : > { %1140 = vmatprep.subr.bf16.mxu0 %v2400_v62  ;;  %1098 = vmatpush1.bf16.msra.mxu1 %v2397_v1 }
 0x1bc   : > { %1099 = vmatprep.subr.bf16.mxu1 %v2390_v5 }
 0x1be   : > { %1141 = vmatpush1.bf16.msra.mxu0 %v2399_v17 }
 0x1bf   : > { %1142 = vmatprep.subr.bf16.mxu0 %v2392_v4  ;;  %1100 = vmatpush1.bf16.msra.mxu1 %v2389_v6 }
 0x1c0   : > { %1101 = vmatprep.subr.bf16.mxu1 %v2382_v7 }
 0x1c2   : > { %1143 = vmatpush1.bf16.msra.mxu0 %v2391_v8  ;;  %v3252_v8 = vshrl.u32 %v432_v22, 7 }
 0x1c3   : > { %1102 = vmatpush1.bf16.msra.mxu1 %v2381_v9  ;;  %1144 = vmatprep.subr.bf16.mxu0 %v2384_v28 }
 0x1c4   : > { %1103 = vmatprep.subr.bf16.mxu1 %v2374_v24  ;;  %v659_v26 = vsub.s32 2, %v3252_v8  ;;  %v663_v22 = vsub.s32 3, %v3252_v8  ;;  %v2724_v24 = vld [vmem:[#allocation5 + $0xb8] sm:$0xff]  }
 0x1c6   : > { %1145 = vmatpush1.bf16.msra.mxu0 %v2383_v31  ;;  %v664_v32 = vrot.slane %v3257_v13, %v663_v22  ;;  %v2738_v22 = vld [vmem:[#allocation5 + $0xd8] sm:$0xff]  }
 0x1c7   : > { %1104 = vmatpush1.bf16.msra.mxu1 %v2373_v27  ;;  %1146 = vmatprep.subr.bf16.mxu0 %v2376_v37  ;;  %v2726_v27 = vld [vmem:[#allocation5 + $0xf0] sm:$0xff]  }
 0x1ca   : > { %1147 = vmatpush1.bf16.msra.mxu0 %v2375_v36 }
 0x1cb   : > { %1148 = vmatprep.subr.bf16.mxu0 %v2368_v46 }
 0x1ce   : > { %1149 = vmatpush1.bf16.msra.mxu0 %v2367_v45 }
 0x1cf   : > { %1150 = vmatprep.subr.bf16.mxu0 %v2360_v57 }
 0x1d2   : > { %1151 = vmatpush1.bf16.msra.mxu0 %v2359_v56  ;;  %v2732_v56 = vld [vmem:[#allocation5 + $0xa8] sm:$0xff]  }
 0x1d3   : > { %1152 = vmatprep.subr.bf16.mxu0 %v2352_v58 }
 0x1d6   : > { %1153 = vmatpush1.bf16.msra.mxu0 %v2351_v59 }
 0x1d9   : > { %1171 = vmatmul.mubr.bf16.vlgmr.msra.gmra.mxu0 %v3207_v54 }
 0x233   : > { %v3214_v11 = vpop.xlane.xlu1 %450 }
 0x234   : > { %vm452_vm3 = vcmp.eq.f32.partialorder %v3191_v30, %v3214_v11  ;;  %v601_v30 = vld [vmem:[#allocation2 + $0x90] sm:$0xff]  ;;  %v457_v60 = vcvt.f32.s32 %v3214_v11  ;;  %v2719_v11 = vld [vmem:[#allocation5 + $0x78] sm:$0xff]  }
 0x235   : > { %v453_v42 = vsel %vm452_vm3, %v448_v12, inf  ;;  %v2366_v34 = vcombine.high %v601_v30, %v605_v29  ;;  %v2720_v12 = vld [vmem:[#allocation5 + $0x38] sm:$0xff]  }
 0x236   : > { %454 = vmin.xlane.f32.xlu0 %v453_v42  ;;  %v458_v62 = vshll.u32 %v457_v60, 16  ;;  %v2721_v42 = vld [vmem:[#allocation5 + $0x70] sm:$0xff]   ;;  %v2734_v60 = vld [vmem:[#allocation5 + $0xe0] sm:$0xff]  }
 0x237   : > { %v3219_v14 = vpop.xlane.xlu1 %465  ;;  %1105 = vmatprep.subr.bf16.mxu1 %v2366_v34 }
 0x238   : > { %vm467_vm4 = vcmp.eq.f32.partialorder %v3198_v33, %v3219_v14  ;;  %v2365_v33 = vcombine.low %v601_v30, %v605_v29  ;;  %v472_v63 = vcvt.f32.s32 %v3219_v14  ;;  %v2722_v14 = vld [vmem:[#allocation5 + $0xf8] sm:$0xff]   ;;  %v660_v29 = vrot.slane %v3257_v13, %v659_v26 }
 0x239   : > { %v468_v16 = vsel %vm467_vm4, %v463_v15, inf  ;;  %v651_v15 = vsub.s32 0, %v3252_v8  ;;  %2540 = vmatprep.subr.bf16.mxu0 %v2722_v14 }
 0x23a   : > { %469 = vmin.xlane.f32.xlu1 %v468_v16  ;;  %1106 = vmatpush1.bf16.msra.mxu1 %v2365_v33  ;;  %v473_v17 = vshll.u32 %v472_v63, 16  ;;  %v655_v16 = vsub.s32 1, %v3252_v8  ;;  %v2728_v33 = vld [vmem:[#allocation5 + $0xb0] sm:$0xff]  }
 0x23b   : > { %1107 = vmatprep.subr.bf16.mxu1 %v2358_v43  ;;  %v652_v31 = vrot.slane %v3257_v13, %v651_v15  ;;  %2541 = vmatpush3.bf16.msra.mxu0 %v2724_v24  ;;  %v2730_v43 = vld [vmem:[#allocation5 + $0xe8] sm:$0xff]  }
 0x23c   : > { %v656_v28 = vrot.slane %v3257_v13, %v655_v16  ;;  %2542 = vmatprep.subr.bf16.mxu0 %v2726_v27 }
 0x23e   : > { %1108 = vmatpush1.bf16.msra.mxu1 %v2357_v41 }
 0x23f   : > { %1109 = vmatprep.subr.bf16.mxu1 %v2350_v51  ;;  %v2729_v51 = vld [vmem:[#allocation5 + $0x60] sm:$0xff]   ;;  %2543 = vmatpush3.bf16.msra.mxu0 %v2728_v33 }
 0x240   : > { %2544 = vmatprep.subr.bf16.mxu0 %v2730_v43 }
 0x242   : > { %1110 = vmatpush1.bf16.msra.mxu1 %v2349_v50 }
 0x243   : > { %2518 = vmatprep.subr.bf16.mxu1 %v2719_v11  ;;  %2545 = vmatpush3.bf16.msra.mxu0 %v2732_v56  ;;  %v2744_v56 = vld [vmem:[#allocation5 + $0x90] sm:$0xff]  }
 0x244   : > { %2546 = vmatprep.subr.bf16.mxu0 %v2734_v60  ;;  %v2748_v60 = vld [vmem:[#allocation5 + $0x88] sm:$0xff]  }
 0x245   : > { %1128 = vmatmul.mubr.bf16.vlgmr.msra.gmra.mxu1 %v3207_v54 }
 0x246   : > { %2519 = vmatpush3.bf16.msra.mxu1 %v2720_v12 }
 0x247   : > { %2520 = vmatprep.subr.bf16.mxu1 %v2721_v42 }
 0x24a   : > { %2521 = vmatpush3.bf16.msra.mxu1 %v2723_v25 }
 0x24b   : > { %2522 = vmatprep.subr.bf16.mxu1 %v2725_v35 }
 0x24e   : > { %2523 = vmatpush3.bf16.msra.mxu1 %v2727_v47 }
 0x24f   : > { %2524 = vmatprep.subr.bf16.mxu1 %v2729_v51  ;;  %v2739_v51 = vld [vmem:[#allocation5 + $0x10] sm:$0xff]  }
 0x276   : > { %v1043_v9 = vpop.f32.mrf.mxu1 }
 0x277   : > { %v3267_v36 = vadd.f32 %v1043_v9, %v652_v31  ;;  %v2733_v9 = vld [vmem:[#allocation5 + $0x58] sm:$0xff]  }
 0x278   : > { %v1045_v20 = vpop.f32.mrf.mxu1 }
 0x279   : > { %v1086_v10 = vpop.f32.mrf.mxu0  ;;  %v3269_v37 = vadd.f32 %v1045_v20, %v656_v28  ;;  %v1197_v48 = vmul.f32 %v3267_v36, %v3267_v36 }
 0x27a   : > { %v1047_v30 = vpop.f32.mrf.mxu1  ;;  %v3273_v39 = vadd.f32 %v1086_v10, %v660_v29  ;;  %v2736_v10 = vld [vmem:[#allocation5 + $0xa0] sm:$0xff]  }
 0x27b   : > { %v1088_v21 = vpop.f32.mrf.mxu0  ;;  %v3271_v38 = vadd.f32 %v1047_v30, %v652_v31  ;;  %v1198_v49 = vmul.f32 %v3269_v37, %v3269_v37  ;;  %v1213_v57 = vmul.f32 %v1197_v48, %v3267_v36  ;;  %v2735_v31 = vld [vmem:[#allocation5 + $0x18] sm:$0xff]   ;;  %2547 = vmatpush3.bf16.msra.mxu0 %v2736_v10  ;;  %v2742_v48 = vld [vmem:[#allocation5 + $0xd0] sm:$0xff]  }
 0x27c   : > { %v1049_v40 = vpop.f32.mrf.mxu1  ;;  %v3277_v45 = vadd.f32 %v1088_v21, %v664_v32  ;;  %v1199_v53 = vmul.f32 %v3273_v39, %v3273_v39  ;;  %2548 = vmatprep.subr.bf16.mxu0 %v2738_v22 }
 0x27d   : > { %v1090_v34 = vpop.f32.mrf.mxu0  ;;  %v3275_v44 = vadd.f32 %v1049_v40, %v656_v28  ;;  %v1205_v52 = vmul.f32 %v3271_v38, %v3271_v38  ;;  %v1214_v58 = vmul.f32 %v1198_v49, %v3269_v37  ;;  %v2737_v28 = vld [vmem:[#allocation5 + $0x50] sm:$0xff]  }
 0x27e   : > { %v3279_v46 = vadd.f32 %v1090_v34, %v660_v29  ;;  %v1200_v59 = vmul.f32 %v3277_v45, %v3277_v45 }
 0x27f   : > { %v1092_v41 = vpop.f32.mrf.mxu0  ;;  %v1206_v55 = vmul.f32 %v3275_v44, %v3275_v44 }
 0x280   : > { %v3285_v50 = vadd.f32 %v1092_v41, %v664_v32  ;;  %v2740_v41 = vld [vmem:[#allocation5 + $0x98] sm:$0xff]  }
 0x281   : > { %v1222_v63 = vmul.f32 %v1206_v55, %v3275_v44  ;;  %2549 = vmatpush3.bf16.msra.mxu0 %v2740_v41 }
 0x282   : > { %2550 = vmatprep.subr.bf16.mxu0 %v2742_v48  ;;  %v2756_v48 = vld [vmem:[#allocation5 + $0x1b8] sm:$0xff]  }
 0x283   : > { %v1238_v42 = vmul.f32 0.044715, %v1222_v63  ;;  %v2750_v63 = vld [vmem:[#allocation5 + $0x178] sm:$0xff]  }
 0x285   : > { %v1254_v25 = vadd.f32 %v1238_v42, %v3275_v44  ;;  %2551 = vmatpush3.bf16.msra.mxu0 %v2744_v56  ;;  %v2759_v56 = vld [vmem:[#allocation5 + $0x128] sm:$0xff]  }
 0x287   : > { %v1270_v43 = vmul.f32 0.7978846, %v1254_v25 }
 0x2bf   : > { %v455_v61 = vpop.xlane.xlu0 %454 }
 0x2c0   : > { %v456_v0 = vcvt.f32.s32 %v455_v61  ;;  %v1221_v61 = vmul.f32 %v1205_v52, %v3271_v38 }
 0x2c2   : > { %v3227_v1 = vadd.s32 %v458_v62, %v456_v0  ;;  %v1215_v62 = vmul.f32 %v1199_v53, %v3273_v39  ;;  %v1207_v0 = vmul.f32 %v3279_v46, %v3279_v46  ;;  %v1237_v11 = vmul.f32 0.044715, %v1221_v61  ;;  %v2741_v53 = vld [vmem:[#allocation5 + $0x48] sm:$0xff]   ;;  %v2749_v61 = vld [vmem:[#allocation5 + $0xc0] sm:$0xff]  }
 0x2c3   : > { %v470_v5 = vpop.xlane.xlu1 %469 }
 0x2c4   : > { %v471_v2 = vcvt.f32.s32 %v470_v5  ;;  %vm475_vm5 = vcmp.eq.s32.totalorder %v3181_v23, %v3227_v1  ;;  %v2731_v5 = vld [vmem:[#allocation5 + $0x20] sm:$0xff]   ;;  %v1231_v12 = vmul.f32 0.044715, %v1215_v62  ;;  %v1223_v14 = vmul.f32 %v1207_v0, %v3279_v46 }
 0x2c5   : > { %v3235_v54 = vsel %vm475_vm5, -1e+30, %v3174_v19  ;;  %v1253_v21 = vadd.f32 %v1237_v11, %v3271_v38  ;;  %2525 = vmatpush3.bf16.msra.mxu1 %v2731_v5  ;;  %v2747_v62 = vld [vmem:[#allocation5] sm:$0xff]   ;;  %v2754_v5 = vld [vmem:[#allocation5 + $0x1f8] sm:$0xff]  }
 0x2c6   : > { %v3237_v3 = vadd.s32 %v473_v17, %v471_v2  ;;  %v479_v4 = vsel %vm434_vm0, %v3235_v54, -inf  ;;  %v1229_v17 = vmul.f32 0.044715, %v1213_v57  ;;  %v1230_v2 = vmul.f32 0.044715, %v1214_v58  ;;  %2526 = vmatprep.subr.bf16.mxu1 %v2733_v9  ;;  %v2746_v57 = vld [vmem:[#allocation5 + $0xc8] sm:$0xff]  }
 0x2c7   : > { %480 = vmax.xlane.f32.xlu0 %v479_v4  ;;  %v1216_v4 = vmul.f32 %v1200_v59, %v3277_v45  ;;  %v1247_v24 = vadd.f32 %v1231_v12, %v3273_v39  ;;  %v1239_v27 = vmul.f32 0.044715, %v1223_v14  ;;  %v1269_v35 = vmul.f32 0.7978846, %v1253_v21  ;;  %v2743_v58 = vld [vmem:[#allocation5 + $0x8] sm:$0xff]   ;;  %v2745_v59 = vld [vmem:[#allocation5 + $0x40] sm:$0xff]   ;;  %2552 = vmatprep.subr.bf16.mxu0 %v2746_v57 }
 0x2c8   : > { %vm476_vm6 = vcmp.eq.s32.totalorder %v3181_v23, %v3237_v3  ;;  %v1245_v15 = vadd.f32 %v1229_v17, %v3267_v36  ;;  %v1246_v16 = vadd.f32 %v1230_v2, %v3269_v37  ;;  %2553 = vmatpush3.bf16.msra.mxu0 %v2748_v60  ;;  %v2751_v0 = vld [vmem:[#allocation5 + $0x80] sm:$0xff]   ;;  %v1181_v2 = vmul.f32 0.5, %v3267_v36  ;;  %v2762_v57 = vld [vmem:[#allocation5 + $0x1e8] sm:$0xff]  }
 0x2c9   : > { %v3247_v6 = vsel %vm476_vm6, -1e+30, %v3172_v18  ;;  %v1232_v20 = vmul.f32 0.044715, %v1216_v4  ;;  %v1263_v33 = vmul.f32 0.7978846, %v1247_v24  ;;  %v1255_v40 = vadd.f32 %v1239_v27, %v3279_v46  ;;  %2527 = vmatpush3.bf16.msra.mxu1 %v2735_v31  ;;  %2554 = vmatprep.subr.bf16.mxu0 %v2749_v61 }
 0x2ca   : > { %v482_v7 = vsel %vm434_vm0, %v3247_v6, -inf  ;;  %v1261_v30 = vmul.f32 0.7978846, %v1245_v15  ;;  %v1262_v29 = vmul.f32 0.7978846, %v1246_v16  ;;  %2528 = vmatprep.subr.bf16.mxu1 %v2737_v28  ;;  %v1182_v9 = vmul.f32 0.5, %v3269_v37 }
 0x2cb   : > { %483 = vmax.xlane.f32.xlu1 %v482_v7  ;;  %v1208_v7 = vmul.f32 %v3285_v50, %v3285_v50  ;;  %v1248_v32 = vadd.f32 %v1232_v20, %v3277_v45  ;;  %v1271_v52 = vmul.f32 0.7978846, %v1255_v40  ;;  %v1183_v14 = vmul.f32 0.5, %v3273_v39  ;;  %v2764_v61 = vld [vmem:[#allocation5 + $0x1a8] sm:$0xff]  }
 0x2cc   : > { %2783 = vtanh.f32 %v1261_v30  ;;  %2555 = vmatpush3.bf16.msra.mxu0 %v2751_v0  ;;  %v1190_v15 = vmul.f32 0.5, %v3275_v44  ;;  %v1191_v37 = vmul.f32 0.5, %v3279_v46  ;;  %v1192_v31 = vmul.f32 0.5, %v3285_v50  ;;  %v2766_v0 = vld [vmem:[#allocation5 + $0x1e0] sm:$0xff]  }
 0x2cd   : > { %v1224_v26 = vmul.f32 %v1208_v7, %v3285_v50  ;;  %2785 = vtanh.f32 %v1262_v29  ;;  %v1264_v49 = vmul.f32 0.7978846, %v1248_v32  ;;  %2529 = vmatpush3.bf16.msra.mxu1 %v2739_v51  ;;  %v1189_v7 = vmul.f32 0.5, %v3271_v38  ;;  %2584 = vmatprep.subr.bf16.mxu0 %v2754_v5  ;;  %v2757_v51 = vld [vmem:[#allocation5 + $0x168] sm:$0xff]  }
 0x2ce   : > { %2787 = vtanh.f32 %v1269_v35  ;;  %2530 = vmatprep.subr.bf16.mxu1 %v2741_v53  ;;  %v2760_v53 = vld [vmem:[#allocation5 + $0x1b0] sm:$0xff]   ;;  %v675_v60 = vsub.s32 6, %v3252_v8 }
 0x2cf   : > { %v1240_v34 = vmul.f32 0.044715, %v1224_v26  ;;  %2789 = vtanh.f32 %v1263_v33  ;;  %v1184_v26 = vmul.f32 0.5, %v3277_v45  ;;  %v2752_v45 = vld [vmem:[#allocation5 + $0x138] sm:$0xff]  }
 0x2d0   : > { %2791 = vtanh.f32 %v1270_v43  ;;  %v2753_v43 = vld [vmem:[#allocation5 + $0x170] sm:$0xff]  }
 0x2d1   : > { %v1256_v47 = vadd.f32 %v1240_v34, %v3285_v50  ;;  %2793 = vtanh.f32 %v1264_v49  ;;  %2531 = vmatpush3.bf16.msra.mxu1 %v2743_v58  ;;  %v2755_v50 = vld [vmem:[#allocation5 + $0x130] sm:$0xff]   ;;  %v2761_v58 = vld [vmem:[#allocation5 + $0x160] sm:$0xff]  }
 0x2d2   : > { %2795 = vtanh.f32 %v1271_v52  ;;  %2532 = vmatprep.subr.bf16.mxu1 %v2745_v59  ;;  %v2758_v49 = vld [vmem:[#allocation5 + $0x1f0] sm:$0xff]   ;;  %v667_v52 = vsub.s32 4, %v3252_v8 }
 0x2d3   : > { %v1272_v55 = vmul.f32 0.7978846, %v1256_v47 }
 0x2d4   : > { %v668_v59 = vrot.slane %v3257_v13, %v667_v52  ;;  %v2778_v52 = vld [vmem:[#allocation5 + $0x1c8] sm:$0xff]  }
 0x2d5   : > { %2797 = vtanh.f32 %v1272_v55  ;;  %2533 = vmatpush3.bf16.msra.mxu1 %v2747_v62  ;;  %v671_v55 = vsub.s32 5, %v3252_v8 }
 0x2d6   : > { %2562 = vmatprep.subr.bf16.mxu1 %v2750_v63  ;;  %v2763_v63 = vld [vmem:[#allocation5 + $0x120] sm:$0xff]  }
 0x2d7   : > { %v672_v62 = vrot.slane %v3257_v13, %v671_v55 }
 0x2d9   : > { %v2784_v17 = vpop.eup %2783 }
 0x2da   : > { %v2786_v4 = vpop.eup %2785  ;;  %v1293_v10 = vadd.f32 1.0, %v2784_v17  ;;  %v679_v17 = vsub.s32 7, %v3252_v8 }
 0x2db   : > { %v2788_v11 = vpop.eup %2787  ;;  %v1294_v12 = vadd.f32 1.0, %v2786_v4 }
 0x2dc   : > { %v2790_v42 = vpop.eup %2789  ;;  %v1301_v16 = vadd.f32 1.0, %v2788_v11  ;;  %v1309_v36 = vmul.f32 %v1293_v10, %v1181_v2  ;;  %v2765_v2 = vld [vmem:[#allocation5 + $0x158] sm:$0xff]   ;;  %v2768_v10 = vld [vmem:[#allocation5 + $0x1a0] sm:$0xff]   ;;  %v680_v8 = vrot.slane %v3257_v13, %v679_v17 }
 0x2dd   : > { %v2792_v20 = vpop.eup %2791  ;;  %v1295_v22 = vadd.f32 1.0, %v2790_v42  ;;  %v1310_v24 = vmul.f32 %v1294_v12, %v1182_v9  ;;  %v676_v9 = vrot.slane %v3257_v13, %v675_v60  ;;  %v2767_v42 = vld [vmem:[#allocation5 + $0x118] sm:$0xff]  }
 0x2de   : > { %v2794_v38 = vpop.eup %2793  ;;  %v1302_v21 = vadd.f32 1.0, %v2792_v20  ;;  %v1317_v25 = vmul.f32 %v1301_v16, %v1189_v7  ;;  %v2769_v16 = vld [vmem:[#allocation5 + $0x150] sm:$0xff]  }
 0x2df   : > { %v2796_v27 = vpop.eup %2795  ;;  %v1296_v28 = vadd.f32 1.0, %v2794_v38  ;;  %v1311_v29 = vmul.f32 %v1295_v22, %v1183_v14  ;;  %v2770_v14 = vld [vmem:[#allocation5 + $0x1d8] sm:$0xff]   ;;  %v1172_v22 = vpop.f32.mrf.mxu0 }
 0x2e0   : > { %v1318_v30 = vmul.f32 %v1302_v21, %v1190_v15  ;;  %v1303_v44 = vadd.f32 1.0, %v2796_v27  ;;  %v1325_v32 = vpack.c.bf16 %v1317_v25, %v1309_v36  ;;  %v3342_v38 = vadd.f32 %v1172_v22, %v676_v9  ;;  %v2772_v21 = vld [vmem:[#allocation5 + $0x198] sm:$0xff]  }
 0x2e1   : > { %v1312_v35 = vmul.f32 %v1296_v28, %v1184_v26  ;;  %v1174_v27 = vpop.f32.mrf.mxu0  ;;  %v2774_v28 = vld [vmem:[#allocation5 + $0x1d0] sm:$0xff]  }
 0x2e2   : > { %v2798_v39 = vpop.eup %2797  ;;  %v1326_v33 = vpack.c.bf16 %v1318_v30, %v1310_v24  ;;  %v1319_v40 = vmul.f32 %v1303_v44, %v1191_v37  ;;  %v3351_v44 = vadd.f32 %v1174_v27, %v680_v8 }
 0x2e3   : > { %v1304_v34 = vadd.f32 1.0, %v2798_v39  ;;  %v1203_v39 = vmul.f32 %v3342_v38, %v3342_v38 }
 0x2e4   : > { %1494 = vmatprep.mubr.bf16.mxu1 %v1326_v33  ;;  %v1550_v46 = vpack.c.bf16 %v1319_v40, %v1311_v29  ;;  %v2773_v29 = vld [vmem:[#allocation5 + $0x148] sm:$0xff]   ;;  %v1176_v33 = vpop.f32.mrf.mxu0 }
 0x2e5   : > { %v1320_v41 = vmul.f32 %v1304_v34, %v1192_v31  ;;  %1495 = vmatmul.mubr.bf16.vlgmr.msra.gmra.mxu1 %v1325_v32  ;;  %v2771_v31 = vld [vmem:[#allocation5 + $0x110] sm:$0xff]  }
 0x2e6   : > { %2563 = vmatpush3.bf16.msra.mxu1 %v2752_v45  ;;  %v1219_v45 = vmul.f32 %v1203_v39, %v3342_v38 }
 0x2e7   : > { %v1551_v47 = vpack.c.bf16 %v1320_v41, %v1312_v35  ;;  %2564 = vmatprep.subr.bf16.mxu1 %v2753_v43  ;;  %v1204_v41 = vmul.f32 %v3351_v44, %v3351_v44  ;;  %v3360_v43 = vadd.f32 %v1176_v33, %v676_v9  ;;  %v2781_v9 = vld [vmem:[#allocation5 + $0x1c0] sm:$0xff]  }
 0x2e9   : > { %1721 = vmatprep.mubr.bf16.mxu0 %v1551_v47  ;;  %v1211_v60 = vmul.f32 %v3360_v43, %v3360_v43 }
 0x2ea   : > { %1722 = vmatmul.mubr.bf16.vlgmr.msra.gmra.mxu0 %v1550_v46  ;;  %2565 = vmatpush3.bf16.msra.mxu1 %v2755_v50  ;;  %v2776_v46 = vld [vmem:[#allocation5 + $0x190] sm:$0xff]  }
 0x2eb   : > { %2585 = vmatpush3.bf16.msra.mxu0 %v2756_v48  ;;  %2566 = vmatprep.subr.bf16.mxu1 %v2757_v51  ;;  %v2775_v51 = vld [vmem:[#allocation5 + $0x108] sm:$0xff]  }
 0x2ec   : > { %2586 = vmatprep.subr.bf16.mxu0 %v2758_v49  ;;  %v1178_v49 = vpop.f32.mrf.mxu0 }
 0x2ee   : > { %2567 = vmatpush3.bf16.msra.mxu1 %v2759_v56  ;;  %v1220_v56 = vmul.f32 %v1204_v41, %v3351_v44 }
 0x2ef   : > { %2587 = vmatpush3.bf16.msra.mxu0 %v2760_v53  ;;  %2568 = vmatprep.subr.bf16.mxu1 %v2761_v58  ;;  %v1235_v53 = vmul.f32 0.044715, %v1219_v45 }
 0x2f0   : > { %2588 = vmatprep.subr.bf16.mxu0 %v2762_v57  ;;  %v2777_v57 = vld [vmem:[#allocation5 + $0x140] sm:$0xff]  }
 0x2f2   : > { %2569 = vmatpush3.bf16.msra.mxu1 %v2763_v63  ;;  %v1236_v63 = vmul.f32 0.044715, %v1220_v56 }
 0x2f3   : > { %2589 = vmatpush3.bf16.msra.mxu0 %v2764_v61  ;;  %2570 = vmatprep.subr.bf16.mxu1 %v2765_v2  ;;  %v1251_v61 = vadd.f32 %v1235_v53, %v3342_v38  ;;  %v1227_v2 = vmul.f32 %v1211_v60, %v3360_v43 }
 0x2f4   : > { %2590 = vmatprep.subr.bf16.mxu0 %v2766_v0  ;;  %v1179_v0 = vadd.f32 %v1178_v49, %v680_v8  ;;  %v1187_v49 = vmul.f32 0.5, %v3342_v38 }
 0x2f6   : > { %2571 = vmatpush3.bf16.msra.mxu1 %v2767_v42  ;;  %v1252_v42 = vadd.f32 %v1236_v63, %v3351_v44 }
 0x2f7   : > { %2591 = vmatpush3.bf16.msra.mxu0 %v2768_v10  ;;  %2572 = vmatprep.subr.bf16.mxu1 %v2769_v16  ;;  %v1267_v10 = vmul.f32 0.7978846, %v1251_v61 }
 0x2f8   : > { %2592 = vmatprep.subr.bf16.mxu0 %v2770_v14  ;;  %v1212_v14 = vmul.f32 %v1179_v0, %v1179_v0  ;;  %v1268_v16 = vmul.f32 0.7978846, %v1252_v42 }
 0x2fa   : > { %2573 = vmatpush3.bf16.msra.mxu1 %v2771_v31 }
 0x2fb   : > { %2593 = vmatpush3.bf16.msra.mxu0 %v2772_v21  ;;  %2574 = vmatprep.subr.bf16.mxu1 %v2773_v29 }
 0x2fc   : > { %2594 = vmatprep.subr.bf16.mxu0 %v2774_v28 }
 0x2fe   : > { %2575 = vmatpush3.bf16.msra.mxu1 %v2775_v51 }
 0x2ff   : > { %2595 = vmatpush3.bf16.msra.mxu0 %v2776_v46  ;;  %2576 = vmatprep.subr.bf16.mxu1 %v2777_v57 }
 0x300   : > { %2596 = vmatprep.subr.bf16.mxu0 %v2778_v52 }
 0x305   : > { %v1129_v5 = vpop.f32.mrf.mxu1 }
 0x306   : > { %v3329_v4 = vadd.f32 %v1129_v5, %v668_v59  ;;  %v2780_v5 = vld [vmem:[#allocation5 + $0x188] sm:$0xff]  }
 0x307   : > { %v1131_v7 = vpop.f32.mrf.mxu1  ;;  %2597 = vmatpush3.bf16.msra.mxu0 %v2780_v5 }
 0x308   : > { %v1201_v11 = vmul.f32 %v3329_v4, %v3329_v4  ;;  %v3334_v12 = vadd.f32 %v1131_v7, %v672_v62  ;;  %v2779_v7 = vld [vmem:[#allocation5 + $0x100] sm:$0xff]   ;;  %2598 = vmatprep.subr.bf16.mxu0 %v2781_v9  ;;  %v1185_v31 = vmul.f32 0.5, %v3329_v4 }
 0x309   : > { %v1133_v15 = vpop.f32.mrf.mxu1  ;;  %2577 = vmatpush3.bf16.msra.mxu1 %v2779_v7 }
 0x30a   : > { %v1217_v20 = vmul.f32 %v1201_v11, %v3329_v4  ;;  %v1202_v36 = vmul.f32 %v3334_v12, %v3334_v12  ;;  %v3340_v26 = vadd.f32 %v1133_v15, %v668_v59  ;;  %v1243_v15 = vmul.f32 0.044715, %v1227_v2 }
 0x30b   : > { %v1135_v37 = vpop.f32.mrf.mxu1 }
 0x30c   : > { %v1233_v24 = vmul.f32 0.044715, %v1217_v20  ;;  %v1218_v25 = vmul.f32 %v1202_v36, %v3334_v12  ;;  %v1209_v13 = vmul.f32 %v3340_v26, %v3340_v26  ;;  %v3349_v30 = vadd.f32 %v1135_v37, %v672_v62  ;;  %v2782_v36 = vld [vmem:[#allocation5 + $0x180] sm:$0xff]  }
 0x30d   : > { %v1228_v20 = vmul.f32 %v1212_v14, %v1179_v0  ;;  %v1259_v22 = vadd.f32 %v1243_v15, %v3360_v43  ;;  %2599 = vmatpush3.bf16.msra.mxu0 %v2782_v36  ;;  %v1193_v28 = vmul.f32 0.5, %v3340_v26 }
 0x30e   : > { %v1249_v32 = vadd.f32 %v1233_v24, %v3329_v4  ;;  %v1234_v34 = vmul.f32 0.044715, %v1218_v25  ;;  %v1225_v35 = vmul.f32 %v1209_v13, %v3340_v26  ;;  %v1210_v40 = vmul.f32 %v3349_v30, %v3349_v30 }
 0x30f   : > { %v1244_v37 = vmul.f32 0.044715, %v1228_v20  ;;  %v1275_v21 = vmul.f32 0.7978846, %v1259_v22  ;;  %v1194_v45 = vmul.f32 0.5, %v3349_v30  ;;  %v1195_v4 = vmul.f32 0.5, %v3360_v43 }
 0x310   : > { %v1265_v47 = vmul.f32 0.7978846, %v1249_v32  ;;  %v1250_v48 = vadd.f32 %v1234_v34, %v3334_v12  ;;  %v1241_v50 = vmul.f32 0.044715, %v1225_v35  ;;  %v1226_v55 = vmul.f32 %v1210_v40, %v3349_v30 }
 0x311   : > { %v1260_v24 = vadd.f32 %v1244_v37, %v1179_v0  ;;  %v1186_v32 = vmul.f32 0.5, %v3334_v12  ;;  %v1188_v12 = vmul.f32 0.5, %v3351_v44 }
 0x312   : > { %2799 = vtanh.f32 %v1265_v47  ;;  %v1266_v58 = vmul.f32 0.7978846, %v1250_v48  ;;  %v1257_v59 = vadd.f32 %v1241_v50, %v3340_v26  ;;  %v1242_v62 = vmul.f32 0.044715, %v1226_v55 }
 0x313   : > { %v1276_v25 = vmul.f32 0.7978846, %v1260_v24 }
 0x314   : > { %2801 = vtanh.f32 %v1266_v58  ;;  %v1273_v17 = vmul.f32 0.7978846, %v1257_v59  ;;  %v1258_v11 = vadd.f32 %v1242_v62, %v3349_v30  ;;  %v1196_v30 = vmul.f32 0.5, %v1179_v0 }
 0x316   : > { %2803 = vtanh.f32 %v1273_v17  ;;  %v1274_v8 = vmul.f32 0.7978846, %v1258_v11 }
 0x317   : > { %2805 = vtanh.f32 %v1267_v10 }
 0x318   : > { %2807 = vtanh.f32 %v1274_v8 }
 0x319   : > { %2809 = vtanh.f32 %v1268_v16 }
 0x31a   : > { %2811 = vtanh.f32 %v1275_v21 }
 0x31b   : > { %2813 = vtanh.f32 %v1276_v25 }
 0x31f   : > { %v2800_v13 = vpop.eup %2799 }
 0x320   : > { %v1297_v39 = vadd.f32 1.0, %v2800_v13 }
 0x321   : > { %v2802_v27 = vpop.eup %2801 }
 0x322   : > { %v1298_v34 = vadd.f32 1.0, %v2802_v27  ;;  %v1313_v41 = vmul.f32 %v1297_v39, %v1185_v31 }
 0x323   : > { %v2804_v29 = vpop.eup %2803 }
 0x324   : > { %v1305_v35 = vadd.f32 1.0, %v2804_v29  ;;  %v2806_v33 = vpop.eup %2805  ;;  %v1314_v50 = vmul.f32 %v1298_v34, %v1186_v32 }
 0x325   : > { %v2808_v40 = vpop.eup %2807  ;;  %v1299_v26 = vadd.f32 1.0, %v2806_v33 }
 0x326   : > { %v1321_v46 = vmul.f32 %v1305_v35, %v1193_v28  ;;  %v2810_v47 = vpop.eup %2809  ;;  %v1306_v48 = vadd.f32 1.0, %v2808_v40 }
 0x327   : > { %v2812_v51 = vpop.eup %2811  ;;  %v1300_v53 = vadd.f32 1.0, %v2810_v47  ;;  %v1315_v59 = vmul.f32 %v1299_v26, %v1187_v49 }
 0x328   : > { %v1322_v52 = vmul.f32 %v1306_v48, %v1194_v45  ;;  %v1778_v55 = vpack.c.bf16 %v1321_v46, %v1313_v41  ;;  %v1307_v56 = vadd.f32 1.0, %v2812_v51  ;;  %v2814_v58 = vpop.eup %2813  ;;  %v2409_v45 = vld [vmem:[%s3552_s5] ss:$0 sm:$0xff] }
 0x329   : > { %v1308_v61 = vadd.f32 1.0, %v2814_v58  ;;  %v1316_v62 = vmul.f32 %v1300_v53, %v1188_v12 }
 0x32a   : > { %v1779_v57 = vpack.c.bf16 %v1322_v52, %v1314_v50  ;;  %v1323_v60 = vmul.f32 %v1307_v56, %v1195_v4  ;;  %v2429_v52 = vld [vmem:[%s3552_s5 + $0x1] ss:$0 sm:$0xff] }
 0x32b   : > { %v1324_v38 = vmul.f32 %v1308_v61, %v1196_v30 }
 0x32c   : > { %1949 = vmatprep.mubr.bf16.mxu1 %v1779_v57  ;;  %v2006_v63 = vpack.c.bf16 %v1323_v60, %v1315_v59  ;;  %v2839_v60 = vld [vmem:[%s3123_s18] sm:$0xff] }
 0x32d   : > { %1950 = vmatmul.mubr.bf16.vlgmr.msra.gmra.mxu1 %v1778_v55  ;;  %v2007_v43 = vpack.c.bf16 %v1324_v38, %v1316_v62  ;;  %v2451_v62 = vld [vmem:[%s3552_s5 + $0x2] ss:$0 sm:$0xff] }
 0x32f   : > { %2177 = vmatprep.mubr.bf16.mxu0 %v2007_v43 }
 0x330   : > { %2178 = vmatmul.mubr.bf16.vlgmr.msra.gmra.mxu0 %v2006_v63 }
 0x350   : > { %v481_v5 = vpop.xlane.xlu0 %480 }
 0x351   : > { %vm485_vm7 = vcmp.eq.f32.partialorder %v3235_v54, %v481_v5 }
 0x352   : > { %v487_v44 = vsel %vm485_vm7, %v3181_v23, 4 }
 0x353   : > { %v489_v17 = vsel %vm434_vm0, %v487_v44, 2147483647 }
 0x354   : > { %v484_v0 = vpop.xlane.xlu1 %483  ;;  %v491_v2 = vshra.s32 %v489_v17, 16  ;;  %v490_v14 = vand.u32 65535, %v489_v17 }
 0x355   : > { %vm486_vm8 = vcmp.eq.f32.partialorder %v3247_v6, %v484_v0  ;;  %v2840_v0 = vld [vmem:[%s3123_s18 + $0x8] sm:$0xff]  ;;  %s2897_s18 = sshll.u32 %s2973_s9, 4  ;;  %s2898_s18 = int_to_ptr.vmem [resolvable:$false] %s2897_s18 }
 0x356   : > { %v488_v7 = vsel %vm486_vm8, %v3181_v23, 4  ;;  %v493_v9 = vcvt.s32.f32 %v491_v2  ;;  %v492_v54 = vcvt.s32.f32 %v490_v14  ;;  %s2899_s23 = scalar_lea.vmem %s2898_s18, 512  ;;  %p2900_p11 = scmp.lt.s32.totalorder %s3498_s24, %s2898_s18 }
 0x357   : > { %v504_v10 = vsel %vm434_vm0, %v488_v7, 2147483647  ;;  %p2901_p0 = scmp.lt.s32.totalorder %s2899_s23, %s2893_s13 }
 0x358   : > { %494 = vmin.xlane.f32.xlu0 %v493_v9  ;;  %v506_v11 = vshra.s32 %v504_v10, 16  ;;  %v505_v8 = vand.u32 65535, %v504_v10 }
 0x359   : > { %p2902_p1 = por %p2901_p0, %p2900_p11 }
 0x35a   : > { %v508_v42 = vcvt.s32.f32 %v506_v11  ;;  %v507_v36 = vcvt.s32.f32 %v505_v8 }
 0x35b   : > { %p2903_p3 = pnand %p2902_p1, %p2896_p8 }
 0x35c   : > { %509 = vmin.xlane.f32.xlu1 %v508_v42 }
 0x3a5   : > { %v2534_v22 = vpop.f32.mrf.mxu1 }
 0x3a7   : > { %v2535_v37 = vpop.f32.mrf.mxu1 }
 0x3a8   : > { %v2536_v33 = vadd.f32 %v2535_v37, %v2534_v22 }
 0x3a9   : > { %v2537_v24 = vpop.f32.mrf.mxu1 }
 0x3aa   : > { %v2556_v21 = vpop.f32.mrf.mxu0  ;;  %v1497_v4 = vadd.f32 %v2536_v33, %v2409_v45 }
 0x3ab   : > { %v2538_v13 = vpop.f32.mrf.mxu1 }
 0x3ac   : > { %v2557_v25 = vpop.f32.mrf.mxu0  ;;  %v2539_v50 = vadd.f32 %v2538_v13, %v2537_v24  ;;  %v1503_v61 = vadd.f32 %v2839_v60, %v1497_v4 }
 0x3ad   : > { %v2558_v26 = vadd.f32 %v2557_v25, %v2556_v21 }
 0x3ae   : > { %v2559_v27 = vpop.f32.mrf.mxu0  ;;  %v1500_v30 = vadd.f32 %v2539_v50, %v2409_v45 }
 0x3af   : > { %v1724_v59 = vadd.f32 %v2558_v26, %v2429_v52 }
 0x3b0   : > { %v2560_v39 = vpop.f32.mrf.mxu0  ;;  %v1504_v2 = vadd.f32 %v2840_v0, %v1500_v30 }
 0x3b1   : > { %v2561_v1 = vadd.f32 %v2560_v39, %v2559_v27  ;;  %v1730_v7 = vadd.f32 %v2839_v60, %v1724_v59 }
 0x3b3   : > { %v1727_v44 = vadd.f32 %v2561_v1, %v2429_v52 }
 0x3b5   : > { %v1731_v11 = vadd.f32 %v2840_v0, %v1727_v44 }
 0x3e1   : > { %v495_v15 = vpop.xlane.xlu0 %494 }
 0x3e2   : > { %vm496_vm9 = vcmp.eq.f32.partialorder %v493_v9, %v495_v15  ;;  %v501_v31 = vcvt.f32.s32 %v495_v15  ;;  %v2473_v9 = vld [vmem:[%s3552_s5 + $0x3] ss:$0 sm:$0xff] }
 0x3e3   : > { %v497_v16 = vsel %vm496_vm9, %v492_v54, inf }
 0x3e4   : > { %498 = vmin.xlane.f32.xlu0 %v497_v16  ;;  %v502_v34 = vshll.u32 %v501_v31, 16 }
 0x3e5   : > { %v510_v20 = vpop.xlane.xlu1 %509 }
 0x3e6   : > { %vm511_vm10 = vcmp.eq.f32.partialorder %v508_v42, %v510_v20  ;;  %v516_v29 = vcvt.f32.s32 %v510_v20 }
 0x3e7   : > { %v512_v6 = vsel %vm511_vm10, %v507_v36, inf }
 0x3e8   : > { %513 = vmin.xlane.f32.xlu1 %v512_v6  ;;  %v517_v47 = vshll.u32 %v516_v29, 16 }
 0x3ed   : > { %v2578_v28 = vpop.f32.mrf.mxu1 }
 0x3ef   : > { %v2579_v40 = vpop.f32.mrf.mxu1 }
 0x3f0   : > { %v2600_v41 = vpop.f32.mrf.mxu0  ;;  %v2580_v58 = vadd.f32 %v2579_v40, %v2578_v28 }
 0x3f1   : > { %v2581_v12 = vpop.f32.mrf.mxu1 }
 0x3f2   : > { %v2601_v53 = vpop.f32.mrf.mxu0  ;;  %v1952_v17 = vadd.f32 %v2580_v58, %v2451_v62 }
 0x3f3   : > { %v2582_v38 = vpop.f32.mrf.mxu1  ;;  %v2602_v3 = vadd.f32 %v2601_v53, %v2600_v41 }
 0x3f4   : > { %v2603_v63 = vpop.f32.mrf.mxu0  ;;  %v1958_v42 = vadd.f32 %v2839_v60, %v1952_v17 }
 0x3f5   : > { %v2180_v14 = vadd.f32 %v2602_v3, %v2473_v9  ;;  %v2972_v3 = vmov 2  }
 0x3f6   : > { %v2604_v10 = vpop.f32.mrf.mxu0 }
 0x3f7   : > { %v2605_v15 = vadd.f32 %v2604_v10, %v2603_v63  ;;  %v2186_v16 = vadd.f32 %v2839_v60, %v2180_v14 }
 0x3f9   : > { %v2183_v54 = vadd.f32 %v2605_v15, %v2473_v9 }
 0x3fb   : > { %v2187_v20 = vadd.f32 %v2840_v0, %v2183_v54 }
 0x46d   : > { %v499_v32 = vpop.xlane.xlu0 %498 }
 0x46e   : > { %v500_v35 = vcvt.f32.s32 %v499_v32 }
 0x470   : > { %v503_v46 = vadd.s32 %v502_v34, %v500_v35 }
 0x471   : > { %v514_v48 = vpop.xlane.xlu1 %513 }
 0x472   : > { %v515_v49 = vcvt.f32.s32 %v514_v48  ;;  %vm519_vm11 = vcmp.eq.s32.totalorder %v3181_v23, %v503_v46 }
 0x473   : > { %vm3393_vm12 = vmor %vm475_vm5, %vm519_vm11 }
 0x474   : > { %v518_v55 = vadd.s32 %v517_v47, %v515_v49  ;;  %v523_v56 = vsel %vm3393_vm12, %v3174_v19, -1e+30 }
 0x475   : > { %v525_v57 = vsel %vm434_vm0, %v523_v56, -inf }
 0x476   : > { %526 = vmax.xlane.f32.xlu0 %v525_v57  ;;  %vm520_vm13 = vcmp.eq.s32.totalorder %v3181_v23, %v518_v55  ;;  %v2583_v23 = vadd.f32 %v2582_v38, %v2581_v12 }
 0x477   : > { %vm3412_vm14 = vmor %vm476_vm6, %vm520_vm13 }
 0x478   : > { %v524_v43 = vsel %vm3412_vm14, %v3172_v18, -1e+30  ;;  %v1955_v18 = vadd.f32 %v2583_v23, %v2451_v62  ;;  %v2971_v23 = vmov 1  }
 0x479   : > { %v528_v5 = vsel %vm434_vm0, %v524_v43, -inf }
 0x47a   : > { %529 = vmax.xlane.f32.xlu1 %v528_v5  ;;  %1505 = vadd.xlane.f32.xlu0 %v1503_v61  ;;  %v1959_v8 = vadd.f32 %v2840_v0, %v1955_v18 }
 0x47e   : > { %1507 = vadd.xlane.f32.xlu1 %v1504_v2  ;;  %1732 = vadd.xlane.f32.xlu0 %v1730_v7 }
 0x482   : > { %1734 = vadd.xlane.f32.xlu1 %v1731_v11  ;;  %1960 = vadd.xlane.f32.xlu0 %v1958_v42 }
 0x486   : > { %1962 = vadd.xlane.f32.xlu1 %v1959_v8  ;;  %2188 = vadd.xlane.f32.xlu0 %v2186_v16 }
 0x48a   : > { %2190 = vadd.xlane.f32.xlu1 %v2187_v20 }
 0x4ff   : > { %v527_v36 = vpop.xlane.xlu0 %526 }
 0x500   : > { %v531_v6 = vsub.f32 %v523_v56, %v527_v36 }
 0x502   : > { %v533_v22 = vmul.f32 1.442695, %v531_v6 }
 0x503   : > { %v530_v37 = vpop.xlane.xlu1 %529  ;;  %v1506_v24 = vpop.xlane.xlu0 %1505 }
 0x504   : > { %2815 = vpow2.f32 %v533_v22  ;;  %v532_v21 = vsub.f32 %v524_v43, %v530_v37  ;;  %v1510_v31 = vmul.f32 0.0078125, %v1506_v24 }
 0x506   : > { %v535_v25 = vmul.f32 1.442695, %v532_v21  ;;  %v3424_v34 = vsub.f32 %v1503_v61, %v1510_v31 }
 0x507   : > { %v1508_v13 = vpop.xlane.xlu1 %1507  ;;  %v1733_v27 = vpop.xlane.xlu0 %1732 }
 0x508   : > { %2817 = vpow2.f32 %v535_v25  ;;  %v1511_v29 = vmul.f32 0.0078125, %v1508_v13  ;;  %v1736_v35 = vmul.f32 0.0078125, %v1733_v27  ;;  %v1514_v4 = vmul.f32 %v3424_v34, %v3424_v34 }
 0x50a   : > { %v3429_v41 = vsub.f32 %v1504_v2, %v1511_v29  ;;  %v3431_v48 = vsub.f32 %v1730_v7, %v1736_v35  ;;  %v2970_v7 = vmov 3  }
 0x50b   : > { %v1735_v28 = vpop.xlane.xlu1 %1734  ;;  %v1961_v32 = vpop.xlane.xlu0 %1960 }
 0x50c   : > { %v1737_v46 = vmul.f32 0.0078125, %v1735_v28  ;;  %v1964_v50 = vmul.f32 0.0078125, %v1961_v32  ;;  %v1515_v12 = vmul.f32 %v3429_v41, %v3429_v41  ;;  %v1740_v57 = vmul.f32 %v3431_v48, %v3431_v48 }
 0x50e   : > { %v3438_v52 = vsub.f32 %v1731_v11, %v1737_v46  ;;  %v3442_v53 = vsub.f32 %v1958_v42, %v1964_v50 }
 0x50f   : > { %v1963_v47 = vpop.xlane.xlu1 %1962  ;;  %v2189_v26 = vpop.xlane.xlu0 %2188 }
 0x510   : > { %v1965_v55 = vmul.f32 0.0078125, %v1963_v47  ;;  %v2192_v56 = vmul.f32 0.0078125, %v2189_v26  ;;  %v1741_v1 = vmul.f32 %v3438_v52, %v3438_v52  ;;  %v1968_v61 = vmul.f32 %v3442_v53, %v3442_v53  ;;  %v2447_v26 = vld [vmem:[%s3553_s6 + $0x1] ss:$0 sm:$0xff] }
 0x511   : > { %v2816_v39 = vpop.eup %2815 }
 0x512   : > { %v537_v33 = vsel %vm3393_vm12, %v2816_v39, 0.0  ;;  %v3448_v58 = vsub.f32 %v1959_v8, %v1965_v55  ;;  %v3450_v59 = vsub.f32 %v2186_v16, %v2192_v56 }
 0x513   : > { %v539_v45 = vsel %vm434_vm0, %v537_v33, 0.0  ;;  %v2191_v30 = vpop.xlane.xlu1 %2190 }
 0x514   : > { %540 = vadd.xlane.f32.xlu0 %v539_v45  ;;  %v2193_v60 = vmul.f32 0.0078125, %v2191_v30  ;;  %v1969_v19 = vmul.f32 %v3448_v58, %v3448_v58  ;;  %v2196_v38 = vmul.f32 %v3450_v59, %v3450_v59 }
 0x515   : > { %v2818_v40 = vpop.eup %2817 }
 0x516   : > { %v538_v49 = vsel %vm3412_vm14, %v2818_v40, 0.0  ;;  %v3454_v62 = vsub.f32 %v2187_v20, %v2193_v60  ;;  %v2449_v60 = vld [vmem:[%s3554_s7 + $0x1] ss:$0 sm:$0xff] }
 0x517   : > { %v542_v51 = vsel %vm434_vm0, %v538_v49, 0.0 }
 0x518   : > { %543 = vadd.xlane.f32.xlu1 %v542_v51  ;;  %1516 = vadd.xlane.f32.xlu0 %v1514_v4  ;;  %v2197_v63 = vmul.f32 %v3454_v62, %v3454_v62 }
 0x51c   : > { %1518 = vadd.xlane.f32.xlu1 %v1515_v12  ;;  %1742 = vadd.xlane.f32.xlu0 %v1740_v57  ;;  %v2426_v12 = vld [vmem:[%s3553_s6] ss:$0 sm:$0xff]  ;;  %v2469_v57 = vld [vmem:[%s3553_s6 + $0x2] ss:$0 sm:$0xff] }
 0x520   : > { %1744 = vadd.xlane.f32.xlu1 %v1741_v1  ;;  %1970 = vadd.xlane.f32.xlu0 %v1968_v61 }
 0x524   : > { %1972 = vadd.xlane.f32.xlu1 %v1969_v19  ;;  %2198 = vadd.xlane.f32.xlu0 %v2196_v38 }
 0x528   : > { %2200 = vadd.xlane.f32.xlu1 %v2197_v63 }
 0x59d   : > { %v541_v43 = vpop.xlane.xlu0 %540 }
 0x59e   : > { %2819 = vrcp.f32 %v541_v43  ;;  %v2491_v43 = vld [vmem:[%s3553_s6 + $0x3] ss:$0 sm:$0xff] }
 0x5a1   : > { %v544_v5 = vpop.xlane.xlu1 %543  ;;  %v1517_v9 = vpop.xlane.xlu0 %1516 }
 0x5a2   : > { %2821 = vrcp.f32 %v544_v5  ;;  %v1520_v15 = vmul.f32 0.0078125, %v1517_v9 }
 0x5a4   : > { %v1522_v22 = vadd.f32 1e-06, %v1520_v15 }
 0x5a5   : > { %v1519_v10 = vpop.xlane.xlu1 %1518  ;;  %v1743_v11 = vpop.xlane.xlu0 %1742 }
 0x5a6   : > { %v1746_v14 = vmul.f32 0.0078125, %v1743_v11  ;;  %v1521_v16 = vmul.f32 0.0078125, %v1519_v10  ;;  %v2493_v10 = vld [vmem:[%s3554_s7 + $0x3] ss:$0 sm:$0xff] }
 0x5a8   : > { %v1748_v36 = vadd.f32 1e-06, %v1746_v14  ;;  %v1523_v25 = vadd.f32 1e-06, %v1521_v16 }
 0x5a9   : > { %v1745_v42 = vpop.xlane.xlu1 %1744  ;;  %v1971_v18 = vpop.xlane.xlu0 %1970 }
 0x5aa   : > { %v1974_v8 = vmul.f32 0.0078125, %v1971_v18  ;;  %v1747_v6 = vmul.f32 0.0078125, %v1745_v42  ;;  %2823 = vrsqrt.f32 %v1748_v36 }
 0x5ab   : > { %v2820_v44 = vpop.eup %2819  ;;  %2825 = vrsqrt.f32 %v1522_v22 }
 0x5ac   : > { %v546_v17 = vmul.f32 %v2820_v44, %v537_v33  ;;  %v1976_v21 = vadd.f32 1e-06, %v1974_v8  ;;  %v1749_v27 = vadd.f32 1e-06, %v1747_v6 }
 0x5ad   : > { %v1973_v54 = vpop.xlane.xlu1 %1972  ;;  %v2199_v20 = vpop.xlane.xlu0 %2198 }
 0x5ae   : > { %551 = vperm.xlu0 %2711, %v546_v17   ;;  %v1975_v37 = vmul.f32 0.0078125, %v1973_v54  ;;  %v2202_v24 = vmul.f32 0.0078125, %v2199_v20  ;;  %2827 = vrsqrt.f32 %v1976_v21 }
 0x5af   : > { %v2822_v0 = vpop.eup %2821  ;;  %2829 = vrsqrt.f32 %v1523_v25 }
 0x5b0   : > { %v548_v2 = vmul.f32 %v2822_v0, %v538_v49  ;;  %v1977_v31 = vadd.f32 1e-06, %v1975_v37  ;;  %v2204_v28 = vadd.f32 1e-06, %v2202_v24  ;;  %2831 = vrsqrt.f32 %v1749_v27 }
 0x5b1   : > { %v2201_v13 = vpop.xlane.xlu1 %2200 }
 0x5b2   : > { %556 = vperm.xlu1 %2712, %v548_v2   ;;  %2718 = vset.pattern.permute.xlu0 %v2970_v7  ;;  %v2203_v39 = vmul.f32 0.0078125, %v2201_v13  ;;  %2833 = vrsqrt.f32 %v1977_v31 }
 0x5b3   : > { %2835 = vrsqrt.f32 %v2204_v28 }
 0x5b4   : > { %v2205_v29 = vadd.f32 1e-06, %v2203_v39 }
 0x5b6   : > { %2713 = vset.pattern.permute.xlu1 %v2971_v23  ;;  %2837 = vrsqrt.f32 %v2205_v29 }
 0x5b7   : > { %564 = vperm.xlu1 %2713, %v548_v2   ;;  %v2824_v33 = vpop.eup %2823 }
 0x5b8   : > { %v2826_v45 = vpop.eup %2825  ;;  %v1752_v50 = vmul.f32 %v2824_v33, %v3431_v48 }
 0x5b9   : > { %v1526_v4 = vmul.f32 %v2826_v45, %v3424_v34 }
 0x5ba   : > { %v1762_v30 = vmul.f32 %v2447_v26, %v1752_v50 }
 0x5bb   : > { %2714 = vset.pattern.permute.xlu1 %v2972_v3  ;;  %v2828_v40 = vpop.eup %2827  ;;  %v1535_v34 = vmul.f32 %v2426_v12, %v1526_v4 }
 0x5bc   : > { %572 = vperm.xlu1 %2714, %v548_v2   ;;  %v2830_v46 = vpop.eup %2829  ;;  %v1980_v55 = vmul.f32 %v2828_v40, %v3442_v53  ;;  %v2427_v53 = vld [vmem:[%s3554_s7] ss:$0 sm:$0xff] }
 0x5bd   : > { %v2832_v49 = vpop.eup %2831  ;;  %v1527_v1 = vmul.f32 %v2830_v46, %v3429_v41  ;;  %v2471_v41 = vld [vmem:[%s3554_s7 + $0x2] ss:$0 sm:$0xff]  ;;  %v1544_v44 = vadd.f32 %v2427_v53, %v1535_v34 }
 0x5be   : > { %v1753_v48 = vmul.f32 %v2832_v49, %v3438_v52  ;;  %v1990_v38 = vmul.f32 %v2469_v57, %v1980_v55 }
 0x5bf   : > { %v2834_v51 = vpop.eup %2833  ;;  %v1536_v0 = vmul.f32 %v2426_v12, %v1527_v1 }
 0x5c0   : > { %2715 = vset.pattern.permute.xlu1 %v2971_v23  ;;  %v2836_v56 = vpop.eup %2835  ;;  %v1981_v61 = vmul.f32 %v2834_v51, %v3448_v58  ;;  %v1763_v5 = vmul.f32 %v2447_v26, %v1753_v48  ;;  %v1772_v58 = vadd.f32 %v2449_v60, %v1762_v30 }
 0x5c1   : > { %560 = vperm.xlu1 %2715, %v546_v17   ;;  %v2208_v63 = vmul.f32 %v2836_v56, %v3450_v59  ;;  %v1545_v14 = vadd.f32 %v2427_v53, %v1536_v0 }
 0x5c2   : > { %v1773_v42 = vadd.f32 %v2449_v60, %v1763_v5 }
 0x5c3   : > { %v2838_v52 = vpop.eup %2837  ;;  %v2218_v59 = vmul.f32 %v2491_v43, %v2208_v63 }
 0x5c4   : > { %v2209_v9 = vmul.f32 %v2838_v52, %v3454_v62 }
 0x5c5   : > { %2716 = vset.pattern.permute.xlu1 %v2972_v3  ;;  %v2000_v3 = vadd.f32 %v2471_v41, %v1990_v38  ;;  %v2228_v16 = vadd.f32 %v2493_v10, %v2218_v59 }
 0x5c6   : > { %568 = vperm.xlu1 %2716, %v546_v17   ;;  %v2219_v20 = vmul.f32 %v2491_v43, %v2209_v9 }
 0x5c8   : > { %v2229_v25 = vadd.f32 %v2493_v10, %v2219_v20 }
 0x5ca   : > { %2717 = vset.pattern.permute.xlu1 %v2970_v7 }
 0x5cb   : > { %576 = vperm.xlu1 %2717, %v546_v17  }
 0x5cf   : > { %580 = vperm.xlu1 %2717, %v548_v2   ;;  %v1991_v2 = vmul.f32 %v2469_v57, %v1981_v61 }
 0x5d1   : > { %v2001_v15 = vadd.f32 %v2471_v41, %v1991_v2 }
 0x629   : > { %v552_v17 = vpop.permute.xlu0 %551 }
 0x62a   : > { %v1546_v11 = vmul.f32 %v1544_v44, %v552_v17 }
 0x62d   : > { %v557_v32 = vpop.permute.xlu1 %556 }
 0x62e   : > { %v1547_v6 = vmul.f32 %v1545_v14, %v557_v32 }
 0x632   : > { %v565_v35 = vpop.permute.xlu1 %564 }
 0x633   : > { %v1775_v54 = vmul.f32 %v1773_v42, %v565_v35 }
 0x635   : > { %v1777_v21 = vadd.f32 %v1775_v54, %v1547_v6 }
 0x637   : > { %v573_v47 = vpop.permute.xlu1 %572 }
 0x638   : > { %v2003_v62 = vmul.f32 %v2001_v15, %v573_v47 }
 0x63a   : > { %v2005_v27 = vadd.f32 %v2003_v62, %v1777_v21 }
 0x63c   : > { %v561_v19 = vpop.permute.xlu1 %560 }
 0x63d   : > { %v1774_v7 = vmul.f32 %v1772_v58, %v561_v19 }
 0x63f   : > { %v1776_v8 = vadd.f32 %v1774_v7, %v1546_v11 }
 0x641   : > { %v569_v23 = vpop.permute.xlu1 %568 }
 0x642   : > { %v2002_v18 = vmul.f32 %v2000_v3, %v569_v23 }
 0x644   : > { %v2004_v22 = vadd.f32 %v2002_v18, %v1776_v8 }
 0x646   : > { %v577_v36 = vpop.permute.xlu1 %576 }
 0x647   : > { %v2230_v37 = vmul.f32 %v2228_v16, %v577_v36 }
 0x649   : > { %v2232_v24 = vadd.f32 %v2230_v37, %v2004_v22 }
 0x64a   : > { %v581_v13 = vpop.permute.xlu1 %580 }
 0x64b   : > { %2234 = vst [vmem:[%s329_s17] sm:$0xff] %v2232_v24  ;;  %v2231_v31 = vmul.f32 %v2229_v25, %v581_v13 }
 0x64d   : > { %v2233_v28 = vadd.f32 %v2231_v31, %v2005_v27 }
 0x64f   : > { %2235 = vst [vmem:[%s329_s17 + $0x8] sm:$0xff] %v2233_v28 }
 0x650   : > { %2906 = shalt.err (!%p2903_p3)
}
 0x651   : > { %s2907_s21 = scalar_lea.hbm %s3503_s10, 256  ;;  %s2911_s17 = scalar_lea.hbm %s3555_s8, 512 }
 0x652   : > { %p2908_p2 = scmp.ne.s32.totalorder %s3503_s10, %s2907_s21  ;;  %p2912_p6 = scmp.lt.s32.totalorder %s3503_s10, %s3555_s8 }
 0x653   : > { %p2913_p9 = scmp.lt.s32.totalorder %s2911_s17, %s2907_s21 }
 0x654   : > { %p2909_p4 = pnand %p2908_p2, %p3059_p5 }
 0x655   : > { %p2914_p7 = por %p2913_p9, %p2912_p6 }
 0x656   : > { %p2910_p13 = pneg %p2909_p4 }
 0x658   : > { %p2915_p10 = pnand %p2914_p7, %p2910_p13 }
 0x65a   : > { %2918 = shalt.err (!%p2915_p10)
}
 0x65b   : > { %s2974_s26 = smov 128   ;;  %s2975_s13 = smov 8  }
 0x65c   : > { %2649 = dma.vmem_to_hbm [thread:$0]  (%p3059_p5), %s3498_s24, 256, %s3503_s10, %s3507_s12, %s2974_s26, %s2974_s26, %s2975_s13  }
 0x65d PF: > { %p2666_p12 = scmp.ge.s32.totalorder %s2961_s30, 2  ;;  %s2265_s9 = sand.u32 1, %s2949_s27  }
 0x65e   : > { %p3569_p8 = scmp.ne.s32.totalorder %s3558_s16, 0  ;;  %s2266_s18 = scalar_lea.sflag [#allocation4], %s2265_s9 }
 0x660   : > { %p2659_p11 = pnand %p2666_p12, %p3569_p8 }
 0x662   : > { %p2660_p0 = pneg %p2659_p11 }
 0x664   : > { %2944 = dma.done.wait (%p2660_p0), %s2266_s18, 256  }
 0x665   : > { %2946 = vsyncadd (%p2660_p0), %s2266_s18, 4294967040  ;;  %p20_p1 = scmp.ge.s32.totalorder %s3046_s11, 4   ;;  %s3570_s27 = smov %s2953_s28 }
 0x666   : > { %s3571_s28 = smov %s2957_s29  ;;  %s3572_s29 = smov %s3057_s14 }
 0x667   : > { %s3573_s30 = smov %s3046_s11  ;;  %22 = sbr.rel (!%p20_p1) target bundleno = 5 (0x5), region = 108 }
 0x66c   :  { %2271 = vsyncpa [#allocation3], 1 }
 0x66d   :  { %2273 = vsyncpa [#allocation3 + $0x1], 1 }
 0x66e   :  { %2274 = vsyncpa [#allocation6], 1 }
 0x66f   :  { %2275 = vsyncpa [#allocation4], 1 }
 0x670   :  { %2277 = vsyncpa [#allocation4 + $0x1], 1 }

</bundles_post_ra>
